<compile_context>
chip_gen: v5e
topology: v5e:2x2
jax: 0.10.0
libtpu: 0.0.40
codegen_flags: <defaults>
</compile_context>

<pallas_src>
import jax
import jax.numpy as jnp
from jax.experimental import pallas as pl
from jax.experimental.pallas import tpu as pltpu

F_IN = 217          # input features
F_OUT = 8           # output features
PACK = 16           # batch rows packed per 128-lane output row (128 // F_OUT)
K_BIG = PACK * F_IN # 3472: contraction dim of the packed matmul
LANE = 128


def _round_up(n, m):
    return ((n + m - 1) // m) * m


def bottlenet_kernel(x_ref, w_ref, b_ref, mix_ref, o_ref):
    # x_ref  : (tr, 3472)    tr packed rows, each holding 16 original batch rows
    # w_ref  : (3472, 128)   kron(I16, W^T), resident in VMEM
    # b_ref  : (1, 128)      bias tiled 16x, resident
    # mix_ref: (4, 128, 128) [0:3] XOR-butterfly lane permutations (d=1,2,4),
    #                        [3]   block-diagonal ones (group-of-8 sum)
    # o_ref  : (tr, 128)     packed softmax output (lane-dense, unmasked stores)
    logits = jnp.dot(x_ref[...], w_ref[...], preferred_element_type=jnp.float32)
    logits = logits + b_ref[...]                       # (tr, 128) f32

    # Dropout(): identity in eval mode.

    # Per-original-row (aligned group of 8 lanes) max via a 3-step XOR butterfly.
    # The lane shuffles are permutation matmuls -> MXU slot (which has slack here),
    # keeping EUP/XLU/VPU work at packed 128-lane density.
    m = logits
    for d in range(3):
        m = jnp.maximum(m, jnp.dot(m, mix_ref[d], preferred_element_type=jnp.float32))

    e = jnp.exp(logits - m)                            # dense-lane EUP work
    s = jnp.dot(e, mix_ref[3], preferred_element_type=jnp.float32)  # group-of-8 sums
    o_ref[...] = (e / s).astype(o_ref.dtype)           # exact normalization


def _make_mix():
    """(4,128,128) f32: XOR-butterfly permutations for d=1,2,4 and block-diag ones."""
    j = jnp.arange(LANE, dtype=jnp.int32)
    mats = []
    for d in (1, 2, 4):
        mats.append((j[:, None] == (j[None, :] ^ d)).astype(jnp.float32))
    mats.append(((j[:, None] // F_OUT) == (j[None, :] // F_OUT)).astype(jnp.float32))
    return jnp.stack(mats, axis=0)


def bottlenet_forward(x, weight, bias, *, block_rows=8192):
    """x: [B, 217] (f32 or bf16), weight: [8, 217] (PyTorch layout), bias: [8]."""
    B, F = x.shape
    OUT, F2 = weight.shape
    assert F == F_IN and F2 == F_IN and OUT == F_OUT and B >= 1

    # ---- wrapper-side packing (pure layout; free when B is a multiple of 16) ----
    B_pad = _round_up(B, PACK)
    if B_pad != B:
        x = jnp.concatenate([x, jnp.zeros((B_pad - B, F), x.dtype)], axis=0)
    R = B_pad // PACK
    x_packed = x.reshape(R, K_BIG)                    # row-major: 16 rows -> 1 packed row

    # Block-diagonal weight so the matmul emits packed (R,128) logits directly.
    w_t = weight.T.astype(jnp.float32)                               # (217, 8)
    w_big = jnp.kron(jnp.eye(PACK, dtype=jnp.float32), w_t)          # (3472, 128)
    w_big = w_big.astype(x.dtype)        # bf16 x -> bf16 weights straight into the MXU
    b_big = jnp.tile(bias.astype(jnp.float32), PACK).reshape(1, LANE)
    mix = _make_mix()

    # ---- batch tiling in packed-row units (tr packed rows = 16*tr original rows) ----
    tr = max(8, block_rows // PACK)
    tr = min(tr, R)
    if tr < R:
        tr = max(8, (tr // 8) * 8)
    elif R >= 16:
        # Force >=2 grid steps so the "parallel" axis can shard across v7x's 2 TCs.
        tr = _round_up(pl.cdiv(R, 2), 8)
    grid = (pl.cdiv(R, tr),)

    # VMEM budget: double-buffered x/out tiles + resident weight/bias/mix + slack.
    x_tile = tr * _round_up(K_BIG, LANE) * x.dtype.itemsize
    o_tile = tr * LANE * 4
    w_bytes = K_BIG * LANE * w_big.dtype.itemsize
    mix_bytes = 4 * LANE * LANE * 4
    vmem_limit = 2 * (x_tile + o_tile + w_bytes + mix_bytes) + (8 << 20)
    vmem_limit = int(min(max(vmem_limit, 16 << 20), 100 << 20))   # v7x-safe at defaults

    out_packed = pl.pallas_call(
        bottlenet_kernel,
        out_shape=jax.ShapeDtypeStruct((R, LANE), jnp.float32),
        grid=grid,
        in_specs=[
            pl.BlockSpec((tr, K_BIG), lambda i: (i, 0)),         # streamed x tiles
            pl.BlockSpec((K_BIG, LANE), lambda i: (0, 0)),       # resident weight
            pl.BlockSpec((1, LANE), lambda i: (0, 0)),           # resident bias
            pl.BlockSpec((4, LANE, LANE), lambda i: (0, 0, 0)),  # resident shuffle mats
        ],
        out_specs=pl.BlockSpec((tr, LANE), lambda i: (i, 0)),    # lane-dense output
        compiler_params=pltpu.CompilerParams(
            dimension_semantics=("parallel",),
            vmem_limit_bytes=vmem_limit,
        ),
    )(x_packed, w_big, b_big, mix)

    # Unpack: (R,128) -> (B_pad,8) -> drop padding rows.
    return out_packed.reshape(B_pad, F_OUT)[:B]


if __name__ == "__main__":
    key = jax.random.PRNGKey(0)
    kx, kw, kb = jax.random.split(key, 3)

    B, IN, OUT = 20, 217, 8     # B not a multiple of 16: exercises padding + packed store
    x = jax.random.normal(kx, (B, IN), dtype=jnp.float32)

    # PyTorch nn.Linear default init: U(-1/sqrt(fan_in), 1/sqrt(fan_in))
    bound = 1.0 / (IN ** 0.5)
    weight = jax.random.uniform(kw, (OUT, IN), minval=-bound, maxval=bound, dtype=jnp.float32)
    bias = jax.random.uniform(kb, (OUT,), minval=-bound, maxval=bound, dtype=jnp.float32)

    out = jax.block_until_ready(bottlenet_forward(x, weight, bias))

    # Reference (eval-mode: Dropout is identity).
    ref = jax.nn.softmax(x @ weight.T + bias, axis=1)
    assert out.shape == (B, OUT)
    assert jnp.allclose(out, ref, atol=5e-3, rtol=5e-3)
    assert jnp.allclose(jnp.sum(out, axis=1), 1.0, atol=5e-3)

    # bf16 input path: halves the dominant HBM read traffic; fed straight to the MXU.
    out_bf16 = jax.block_until_ready(bottlenet_forward(x.astype(jnp.bfloat16), weight, bias))
    assert out_bf16.shape == (B, OUT)
    assert jnp.allclose(out_bf16, ref, atol=2e-2)
    assert jnp.allclose(jnp.sum(out_bf16, axis=1), 5e-3 + 1.0 - 5e-3, atol=5e-3)

    print("KERNEL_OK")
</pallas_src>

<mosaic_0001>
module attributes {stable_mosaic.version = 11 : i64} {
  func.func @bottlenet_kernel(%arg0: i32, %arg1: memref<2x3472xf32, #tpu.memory_space<vmem>>, %arg2: memref<3472x128xf32, #tpu.memory_space<vmem>>, %arg3: memref<1x128xf32, #tpu.memory_space<vmem>>, %arg4: memref<4x128x128xf32, #tpu.memory_space<vmem>>, %arg5: memref<2x128xf32, #tpu.memory_space<vmem>>) attributes {dimension_semantics = [#tpu.dimension_semantics<parallel>], iteration_bounds = array<i64: 1>, scalar_prefetch = 0 : i64, scratch_operands = 0 : i64, tpu.core_type = #tpu.core_type<tc>, window_params = [{transform_indices = @transform_0, window_bounds = array<i64: 2, 3472>}, {pipeline_mode = #tpu.pipeline_mode<synchronous>, transform_indices = @transform_1, window_bounds = array<i64: 3472, 128>}, {pipeline_mode = #tpu.pipeline_mode<synchronous>, transform_indices = @transform_2, window_bounds = array<i64: 1, 128>}, {pipeline_mode = #tpu.pipeline_mode<synchronous>, transform_indices = @transform_3, window_bounds = array<i64: 4, 128, 128>}, {transform_indices = @transform_4, window_bounds = array<i64: 2, 128>}]} {
    %c0 = arith.constant 0 : index
    %c0_0 = arith.constant 0 : index
    %0 = vector.load %arg1[%c0, %c0_0] : memref<2x3472xf32, #tpu.memory_space<vmem>>, vector<2x3472xf32>
    %c0_1 = arith.constant 0 : index
    %c0_2 = arith.constant 0 : index
    %1 = vector.load %arg2[%c0_1, %c0_2] : memref<3472x128xf32, #tpu.memory_space<vmem>>, vector<3472x128xf32>
    %cst = arith.constant dense<0.000000e+00> : vector<2x128xf32>
    %2 = tpu.matmul %0, %1, %cst {dimension_numbers = #tpu.dot_dimension_numbers<[1], [0], [0], [1], [0, 0, 1, 1], [], []>} : vector<2x3472xf32>, vector<3472x128xf32>, vector<2x128xf32> -> vector<2x128xf32>
    %c0_3 = arith.constant 0 : index
    %c0_4 = arith.constant 0 : index
    %3 = vector.load %arg3[%c0_3, %c0_4] : memref<1x128xf32, #tpu.memory_space<vmem>>, vector<1x128xf32>
    %4 = vector.broadcast %3 : vector<1x128xf32> to vector<2x128xf32>
    %5 = arith.addf %2, %4 : vector<2x128xf32>
    %c0_5 = arith.constant 0 : index
    %c0_6 = arith.constant 0 : index
    %c0_7 = arith.constant 0 : index
    %6 = vector.load %arg4[%c0_5, %c0_6, %c0_7] : memref<4x128x128xf32, #tpu.memory_space<vmem>>, vector<1x128x128xf32>
    %7 = vector.shape_cast %6 : vector<1x128x128xf32> to vector<128x128xf32>
    %cst_8 = arith.constant dense<0.000000e+00> : vector<2x128xf32>
    %8 = tpu.matmul %5, %7, %cst_8 {dimension_numbers = #tpu.dot_dimension_numbers<[1], [0], [0], [1], [0, 0, 1, 1], [], []>} : vector<2x128xf32>, vector<128x128xf32>, vector<2x128xf32> -> vector<2x128xf32>
    %9 = arith.maximumf %5, %8 : vector<2x128xf32>
    %c1 = arith.constant 1 : index
    %c0_9 = arith.constant 0 : index
    %c0_10 = arith.constant 0 : index
    %10 = vector.load %arg4[%c1, %c0_9, %c0_10] : memref<4x128x128xf32, #tpu.memory_space<vmem>>, vector<1x128x128xf32>
    %11 = vector.shape_cast %10 : vector<1x128x128xf32> to vector<128x128xf32>
    %cst_11 = arith.constant dense<0.000000e+00> : vector<2x128xf32>
    %12 = tpu.matmul %9, %11, %cst_11 {dimension_numbers = #tpu.dot_dimension_numbers<[1], [0], [0], [1], [0, 0, 1, 1], [], []>} : vector<2x128xf32>, vector<128x128xf32>, vector<2x128xf32> -> vector<2x128xf32>
    %13 = arith.maximumf %9, %12 : vector<2x128xf32>
    %c2 = arith.constant 2 : index
    %c0_12 = arith.constant 0 : index
    %c0_13 = arith.constant 0 : index
    %14 = vector.load %arg4[%c2, %c0_12, %c0_13] : memref<4x128x128xf32, #tpu.memory_space<vmem>>, vector<1x128x128xf32>
    %15 = vector.shape_cast %14 : vector<1x128x128xf32> to vector<128x128xf32>
    %cst_14 = arith.constant dense<0.000000e+00> : vector<2x128xf32>
    %16 = tpu.matmul %13, %15, %cst_14 {dimension_numbers = #tpu.dot_dimension_numbers<[1], [0], [0], [1], [0, 0, 1, 1], [], []>} : vector<2x128xf32>, vector<128x128xf32>, vector<2x128xf32> -> vector<2x128xf32>
    %17 = arith.maximumf %13, %16 : vector<2x128xf32>
    %18 = arith.subf %5, %17 : vector<2x128xf32>
    %19 = math.exp %18 : vector<2x128xf32>
    %c3 = arith.constant 3 : index
    %c0_15 = arith.constant 0 : index
    %c0_16 = arith.constant 0 : index
    %20 = vector.load %arg4[%c3, %c0_15, %c0_16] : memref<4x128x128xf32, #tpu.memory_space<vmem>>, vector<1x128x128xf32>
    %21 = vector.shape_cast %20 : vector<1x128x128xf32> to vector<128x128xf32>
    %cst_17 = arith.constant dense<0.000000e+00> : vector<2x128xf32>
    %22 = tpu.matmul %19, %21, %cst_17 {dimension_numbers = #tpu.dot_dimension_numbers<[1], [0], [0], [1], [0, 0, 1, 1], [], []>} : vector<2x128xf32>, vector<128x128xf32>, vector<2x128xf32> -> vector<2x128xf32>
    %23 = arith.divf %19, %22 : vector<2x128xf32>
    %c0_18 = arith.constant 0 : index
    %c0_19 = arith.constant 0 : index
    %24 = vector.load %arg5[%c0_18, %c0_19] : memref<2x128xf32, #tpu.memory_space<vmem>>, vector<2x128xf32>
    tpu.vector_store %arg5[%c0_18, %c0_19], %23 {strides = array<i32>} : memref<2x128xf32, #tpu.memory_space<vmem>>, vector<2x128xf32>,
    return
  }
  func.func @transform_0(%arg0: i32) -> (i32, i32) {
    %c0_i32 = arith.constant 0 : i32
    %c0_i32_0 = arith.constant 0 : i32
    return %arg0, %c0_i32 : i32, i32
  }
  func.func @transform_1(%arg0: i32) -> (i32, i32) {
    %c0_i32 = arith.constant 0 : i32
    %c0_i32_0 = arith.constant 0 : i32
    %c0_i32_1 = arith.constant 0 : i32
    return %c0_i32, %c0_i32_0 : i32, i32
  }
  func.func @transform_2(%arg0: i32) -> (i32, i32) {
    %c0_i32 = arith.constant 0 : i32
    %c0_i32_0 = arith.constant 0 : i32
    %c0_i32_1 = arith.constant 0 : i32
    return %c0_i32, %c0_i32_0 : i32, i32
  }
  func.func @transform_3(%arg0: i32) -> (i32, i32, i32) {
    %c0_i32 = arith.constant 0 : i32
    %c0_i32_0 = arith.constant 0 : i32
    %c0_i32_1 = arith.constant 0 : i32
    %c0_i32_2 = arith.constant 0 : i32
    return %c0_i32, %c0_i32_0, %c0_i32_1 : i32, i32, i32
  }
  func.func @transform_4(%arg0: i32) -> (i32, i32) {
    %c0_i32 = arith.constant 0 : i32
    %c0_i32_0 = arith.constant 0 : i32
    return %arg0, %c0_i32 : i32, i32
  }
}

</mosaic_0001>

<bundles_post_ra>
// kernel: tpu_custom_call.1
= control target key start
LH: loop header
LB: loop body
LE: loop exit
PB: predicated region body
PF: predicated region fallthrough
CT: control target
= control target key end

     0   :  { %9 = vsyncpa [#allocation3], 0  ;;  %s1578_s0 = inlined_call_operand.hbm [shape: f32[2,3472], index: 0, kind: input, shape index: {}]   ;;  %s1579_s1 = inlined_call_operand.hbm [shape: f32[3472,128], index: 1, kind: input, shape index: {}]   ;;  %s1580_s2 = inlined_call_operand.hbm [shape: f32[1,128], index: 2, kind: input, shape index: {}]   ;;  %s1581_s3 = inlined_call_operand.hbm [shape: f32[4,128,128], index: 3, kind: input, shape index: {}]   ;;  %s1582_s4 = inlined_call_operand.hbm [shape: f32[2,128], index: 4, kind: output, shape index: {}]  }
   0x1   :  { %10 = vsyncpa [#allocation6], 0 }
   0x2   :  { %11 = vsyncpa [#allocation9], 0  ;;  %s28_s17 = sshll.u32 %s1579_s1, 4  ;;  %s29_s17 = int_to_ptr.hbm [resolvable:$true] %s28_s17 }
   0x3   :  { %12 = vsyncpa [#allocation4], 0  ;;  %s1484_s18 = smov [#allocation5]   ;;  %s18_s22 = sshll.u32 %s1578_s0, 4  ;;  %s19_s22 = int_to_ptr.hbm [resolvable:$true] %s18_s22 }
   0x4   :  { %s30_s19 = sshll.u32 %s1484_s18, 4  ;;  %s1485_s23 = smov 128   ;;  %s31_s19 = int_to_ptr.vmem [resolvable:$true] %s30_s19 }
   0x5   :  { %s1486_s24 = smov 8   ;;  %s1487_s25 = smov [#allocation2]  }
   0x6   :  { %36 = dma.hbm_to_vmem [thread:$0]  %s29_s17, 55552, %s31_s19, [#allocation6], %s1485_s23, %s1485_s23, %s1486_s24  }
   0x7   :  { %s20_s26 = sshll.u32 %s1487_s25, 4  ;;  %s42_s29 = sshll.u32 %s1580_s2, 4  ;;  %s21_s26 = int_to_ptr.vmem [resolvable:$true] %s20_s26  ;;  %s43_s29 = int_to_ptr.hbm [resolvable:$true] %s42_s29 }
   0x8   :  { %23 = dma.hbm_to_vmem [thread:$0]  %s19_s22, 896, %s21_s26, [#allocation3]  }
   0x9   :  { %s52_s5 = sshll.u32 %s1581_s3, 4  ;;  %s1488_s6 = smov [#allocation7]   ;;  %s53_s5 = int_to_ptr.hbm [resolvable:$true] %s52_s5 }
   0xa   :  { %s44_s7 = sshll.u32 %s1488_s6, 4  ;;  %s1489_s0 = smov [#allocation8]   ;;  %s45_s7 = int_to_ptr.vmem [resolvable:$true] %s44_s7 }
   0xb   :  { %47 = dma.hbm_to_vmem [thread:$0]  %s43_s29, 16, %s45_s7, [#allocation6]  }
   0xc   :  { %s54_s8 = sshll.u32 %s1489_s0, 4  ;;  %s55_s8 = int_to_ptr.vmem [resolvable:$true] %s54_s8 }
   0xd   :  { %60 = dma.hbm_to_vmem [thread:$0]  %s53_s5, 8192, %s55_s8, [#allocation9], %s1485_s23, %s1485_s23, %s1486_s24  }
   0xe   :  { %1476 = dma.done.wait [#allocation3], 896  }
   0xf   :  { %1477 = vsyncadd [#allocation3], 4294966400 }
  0x10   :  { %1478 = dma.done.wait [#allocation6], 55568  }
  0x11   :  { %1479 = vsyncadd [#allocation6], 4294911728 }
  0x12   :  { %1480 = dma.done.wait [#allocation9], 8192  }
  0x13   :  { %1481 = vsyncadd [#allocation9], 4294959104  ;;  %v99_v0 = vld [vmem:[#allocation5 + $0x78] sm:$0xff]  ;;  %v98_v2 = vld [vmem:[#allocation5 + $0x70] sm:$0xff]  ;;  %vm592_vm0 = vcmask 130048   ;;  %s1490_s2 = smov [#allocation10]  }
  0x14   :  { %v131_v1 = vld [vmem:[#allocation5 + $0x178] sm:$0xff]  ;;  %595 = vmatpush.msra.mxu0 %v99_v0  ;;  %v130_v4 = vld [vmem:[#allocation5 + $0x170] sm:$0xff]  ;;  %v97_v6 = vld [vmem:[#allocation5 + $0x68] sm:$0xff]  ;;  %s1329_s3 = sshll.u32 %s1490_s2, 4  ;;  %s1331_s11 = sshll.u32 %s1582_s4, 4  ;;  %s1330_s3 = int_to_ptr.vmem [resolvable:$true] %s1329_s3  ;;  %s1332_s11 = int_to_ptr.hbm [resolvable:$true] %s1331_s11 }
  0x15   :  { %635 = vmatpush.msra.mxu2 %v131_v1  ;;  %v115_v3 = vld [vmem:[#allocation5 + $0xf8] sm:$0xff]  ;;  %v114_v7 = vld [vmem:[#allocation5 + $0xf0] sm:$0xff]  ;;  %v129_v8 = vld [vmem:[#allocation5 + $0x168] sm:$0xff] }
  0x16   :  { %v147_v5 = vld [vmem:[#allocation5 + $0x1f8] sm:$0xff]  ;;  %615 = vmatpush.msra.mxu1 %v115_v3  ;;  %596 = vmatpush.msra.mxu0 %v98_v2  ;;  %v146_v9 = vld [vmem:[#allocation5 + $0x1f0] sm:$0xff]  ;;  %v113_v10 = vld [vmem:[#allocation5 + $0xe8] sm:$0xff] }
  0x17   :  { %655 = vmatpush.msra.mxu3 %v147_v5  ;;  %636 = vmatpush.msra.mxu2 %v130_v4  ;;  %v96_v11 = vld [vmem:[#allocation5 + $0x60] sm:$0xff]  ;;  %v145_v13 = vld [vmem:[#allocation5 + $0x1e8] sm:$0xff]  ;;  %v95_v16 = vld [vmem:[#allocation5 + $0x58] sm:$0xff] }
  0x18   :  { %616 = vmatpush.msra.mxu1 %v114_v7  ;;  %v128_v12 = vld [vmem:[#allocation5 + $0x160] sm:$0xff]  ;;  %597 = vmatpush.msra.mxu0 %v97_v6  ;;  %v127_v17 = vld [vmem:[#allocation5 + $0x158] sm:$0xff]  ;;  %v94_v20 = vld [vmem:[#allocation5 + $0x50] sm:$0xff] }
  0x19   :  { %656 = vmatpush.msra.mxu3 %v146_v9  ;;  %637 = vmatpush.msra.mxu2 %v129_v8  ;;  %v112_v14 = vld [vmem:[#allocation5 + $0xe0] sm:$0xff]  ;;  %v111_v18 = vld [vmem:[#allocation5 + $0xd8] sm:$0xff]  ;;  %v126_v21 = vld [vmem:[#allocation5 + $0x150] sm:$0xff] }
  0x1a   :  { %v144_v15 = vld [vmem:[#allocation5 + $0x1e0] sm:$0xff]  ;;  %617 = vmatpush.msra.mxu1 %v113_v10  ;;  %598 = vmatpush.msra.mxu0 %v96_v11  ;;  %v143_v19 = vld [vmem:[#allocation5 + $0x1d8] sm:$0xff]  ;;  %v110_v22 = vld [vmem:[#allocation5 + $0xd0] sm:$0xff] }
  0x1b   :  { %657 = vmatpush.msra.mxu3 %v145_v13  ;;  %638 = vmatpush.msra.mxu2 %v128_v12  ;;  %v142_v23 = vld [vmem:[#allocation5 + $0x1d0] sm:$0xff]  ;;  %v93_v24 = vld [vmem:[#allocation5 + $0x48] sm:$0xff]  ;;  %v92_v28 = vld [vmem:[#allocation5 + $0x40] sm:$0xff] }
  0x1c   :  { %618 = vmatpush.msra.mxu1 %v112_v14  ;;  %599 = vmatpush.msra.mxu0 %v95_v16  ;;  %v125_v25 = vld [vmem:[#allocation5 + $0x148] sm:$0xff]  ;;  %v124_v29 = vld [vmem:[#allocation5 + $0x140] sm:$0xff]  ;;  %v91_v32 = vld [vmem:[#allocation5 + $0x38] sm:$0xff] }
  0x1d   :  { %658 = vmatpush.msra.mxu3 %v144_v15  ;;  %639 = vmatpush.msra.mxu2 %v127_v17  ;;  %v109_v26 = vld [vmem:[#allocation5 + $0xc8] sm:$0xff]  ;;  %v108_v30 = vld [vmem:[#allocation5 + $0xc0] sm:$0xff]  ;;  %v123_v33 = vld [vmem:[#allocation5 + $0x138] sm:$0xff] }
  0x1e   :  { %619 = vmatpush.msra.mxu1 %v111_v18  ;;  %600 = vmatpush.msra.mxu0 %v94_v20  ;;  %v141_v27 = vld [vmem:[#allocation5 + $0x1c8] sm:$0xff]  ;;  %v140_v31 = vld [vmem:[#allocation5 + $0x1c0] sm:$0xff]  ;;  %v107_v34 = vld [vmem:[#allocation5 + $0xb8] sm:$0xff] }
  0x1f   :  { %659 = vmatpush.msra.mxu3 %v143_v19  ;;  %640 = vmatpush.msra.mxu2 %v126_v21  ;;  %v139_v35 = vld [vmem:[#allocation5 + $0x1b8] sm:$0xff]  ;;  %v90_v36 = vld [vmem:[#allocation5 + $0x30] sm:$0xff]  ;;  %v89_v40 = vld [vmem:[#allocation5 + $0x28] sm:$0xff] }
  0x20   :  { %620 = vmatpush.msra.mxu1 %v110_v22  ;;  %601 = vmatpush.msra.mxu0 %v93_v24  ;;  %v122_v37 = vld [vmem:[#allocation5 + $0x130] sm:$0xff]  ;;  %v121_v41 = vld [vmem:[#allocation5 + $0x128] sm:$0xff]  ;;  %v88_v44 = vld [vmem:[#allocation5 + $0x20] sm:$0xff] }
  0x21   :  { %660 = vmatpush.msra.mxu3 %v142_v23  ;;  %641 = vmatpush.msra.mxu2 %v125_v25  ;;  %v106_v38 = vld [vmem:[#allocation5 + $0xb0] sm:$0xff]  ;;  %v105_v42 = vld [vmem:[#allocation5 + $0xa8] sm:$0xff]  ;;  %v120_v45 = vld [vmem:[#allocation5 + $0x120] sm:$0xff] }
  0x22   :  { %621 = vmatpush.msra.mxu1 %v109_v26  ;;  %602 = vmatpush.msra.mxu0 %v92_v28  ;;  %v138_v39 = vld [vmem:[#allocation5 + $0x1b0] sm:$0xff]  ;;  %v137_v43 = vld [vmem:[#allocation5 + $0x1a8] sm:$0xff]  ;;  %v104_v46 = vld [vmem:[#allocation5 + $0xa0] sm:$0xff] }
  0x23   :  { %661 = vmatpush.msra.mxu3 %v141_v27  ;;  %642 = vmatpush.msra.mxu2 %v124_v29  ;;  %v136_v47 = vld [vmem:[#allocation5 + $0x1a0] sm:$0xff]  ;;  %v87_v48 = vld [vmem:[#allocation5 + $0x18] sm:$0xff]  ;;  %v86_v52 = vld [vmem:[#allocation5 + $0x10] sm:$0xff] }
  0x24   :  { %622 = vmatpush.msra.mxu1 %v108_v30  ;;  %603 = vmatpush.msra.mxu0 %v91_v32  ;;  %v119_v49 = vld [vmem:[#allocation5 + $0x118] sm:$0xff]  ;;  %v118_v53 = vld [vmem:[#allocation5 + $0x110] sm:$0xff]  ;;  %v85_v56 = vld [vmem:[#allocation5 + $0x8] sm:$0xff] }
  0x25   :  { %662 = vmatpush.msra.mxu3 %v140_v31  ;;  %643 = vmatpush.msra.mxu2 %v123_v33  ;;  %v103_v50 = vld [vmem:[#allocation5 + $0x98] sm:$0xff]  ;;  %v102_v54 = vld [vmem:[#allocation5 + $0x90] sm:$0xff]  ;;  %v117_v57 = vld [vmem:[#allocation5 + $0x108] sm:$0xff] }
  0x26   :  { %623 = vmatpush.msra.mxu1 %v107_v34  ;;  %604 = vmatpush.msra.mxu0 %v90_v36  ;;  %v135_v51 = vld [vmem:[#allocation5 + $0x198] sm:$0xff]  ;;  %v134_v55 = vld [vmem:[#allocation5 + $0x190] sm:$0xff]  ;;  %v101_v58 = vld [vmem:[#allocation5 + $0x88] sm:$0xff] }
  0x27   :  { %663 = vmatpush.msra.mxu3 %v139_v35  ;;  %644 = vmatpush.msra.mxu2 %v122_v37  ;;  %v133_v59 = vld [vmem:[#allocation5 + $0x188] sm:$0xff]  ;;  %v84_v60 = vld [vmem:[#allocation5] sm:$0xff]  ;;  %v163_v62 = vld [vmem:[#allocation5 + $0x278] sm:$0xff] }
  0x28   :  { %624 = vmatpush.msra.mxu1 %v106_v38  ;;  %605 = vmatpush.msra.mxu0 %v89_v40  ;;  %v116_v61 = vld [vmem:[#allocation5 + $0x100] sm:$0xff]  ;;  %v195_v63 = vld [vmem:[#allocation5 + $0x378] sm:$0xff]  ;;  %v162_v2 = vld [vmem:[#allocation5 + $0x270] sm:$0xff] }
  0x29   :  { %664 = vmatpush.msra.mxu3 %v138_v39  ;;  %645 = vmatpush.msra.mxu2 %v121_v41  ;;  %v100_v0 = vld [vmem:[#allocation5 + $0x80] sm:$0xff]  ;;  %v179_v3 = vld [vmem:[#allocation5 + $0x2f8] sm:$0xff]  ;;  %v194_v4 = vld [vmem:[#allocation5 + $0x370] sm:$0xff] }
  0x2a   :  { %625 = vmatpush.msra.mxu1 %v105_v42  ;;  %606 = vmatpush.msra.mxu0 %v88_v44  ;;  %v132_v1 = vld [vmem:[#allocation5 + $0x180] sm:$0xff]  ;;  %v211_v5 = vld [vmem:[#allocation5 + $0x3f8] sm:$0xff]  ;;  %v161_v6 = vld [vmem:[#allocation5 + $0x268] sm:$0xff] }
  0x2b   :  { %665 = vmatpush.msra.mxu3 %v137_v43  ;;  %646 = vmatpush.msra.mxu2 %v120_v45  ;;  %v178_v7 = vld [vmem:[#allocation5 + $0x2f0] sm:$0xff]  ;;  %v193_v8 = vld [vmem:[#allocation5 + $0x368] sm:$0xff]  ;;  %v160_v10 = vld [vmem:[#allocation5 + $0x260] sm:$0xff] }
  0x2c   :  { %626 = vmatpush.msra.mxu1 %v104_v46  ;;  %607 = vmatpush.msra.mxu0 %v87_v48  ;;  %v210_v9 = vld [vmem:[#allocation5 + $0x3f0] sm:$0xff]  ;;  %v177_v11 = vld [vmem:[#allocation5 + $0x2e8] sm:$0xff]  ;;  %v192_v12 = vld [vmem:[#allocation5 + $0x360] sm:$0xff] }
  0x2d   :  { %666 = vmatpush.msra.mxu3 %v136_v47  ;;  %647 = vmatpush.msra.mxu2 %v119_v49  ;;  %v209_v13 = vld [vmem:[#allocation5 + $0x3e8] sm:$0xff]  ;;  %v159_v14 = vld [vmem:[#allocation5 + $0x258] sm:$0xff]  ;;  %v176_v15 = vld [vmem:[#allocation5 + $0x2e0] sm:$0xff] }
  0x2e   :  { %627 = vmatpush.msra.mxu1 %v103_v50  ;;  %608 = vmatpush.msra.mxu0 %v86_v52  ;;  %v191_v16 = vld [vmem:[#allocation5 + $0x358] sm:$0xff]  ;;  %v208_v17 = vld [vmem:[#allocation5 + $0x3e0] sm:$0xff]  ;;  %v158_v18 = vld [vmem:[#allocation5 + $0x250] sm:$0xff] }
  0x2f   :  { %667 = vmatpush.msra.mxu3 %v135_v51  ;;  %648 = vmatpush.msra.mxu2 %v118_v53  ;;  %v175_v19 = vld [vmem:[#allocation5 + $0x2d8] sm:$0xff]  ;;  %v190_v20 = vld [vmem:[#allocation5 + $0x350] sm:$0xff]  ;;  %v157_v22 = vld [vmem:[#allocation5 + $0x248] sm:$0xff] }
  0x30   :  { %628 = vmatpush.msra.mxu1 %v102_v54  ;;  %609 = vmatpush.msra.mxu0 %v85_v56  ;;  %v207_v21 = vld [vmem:[#allocation5 + $0x3d8] sm:$0xff]  ;;  %v174_v23 = vld [vmem:[#allocation5 + $0x2d0] sm:$0xff]  ;;  %v189_v24 = vld [vmem:[#allocation5 + $0x348] sm:$0xff] }
  0x31   :  { %668 = vmatpush.msra.mxu3 %v134_v55  ;;  %649 = vmatpush.msra.mxu2 %v117_v57  ;;  %v206_v25 = vld [vmem:[#allocation5 + $0x3d0] sm:$0xff]  ;;  %v77_v26 = vld [vmem:[#allocation2] sm:$0xff]  ;;  %v156_v27 = vld [vmem:[#allocation5 + $0x240] sm:$0xff] }
  0x32   :  { %629 = vmatpush.msra.mxu1 %v101_v58  ;;  %610 = vmatpush.msra.mxu0 %v84_v60  ;;  %v173_v28 = vld [vmem:[#allocation5 + $0x2c8] sm:$0xff]  ;;  %529 = vst [vmem:[#allocation1] ss:$4 sm:$0xff] %v77_v26  ;;  %v188_v29 = vld [vmem:[#allocation5 + $0x340] sm:$0xff]  ;;  %v155_v31 = vld [vmem:[#allocation5 + $0x238] sm:$0xff] }
  0x33   :  { %669 = vmatpush.msra.mxu3 %v133_v59  ;;  %650 = vmatpush.msra.mxu2 %v116_v61  ;;  %v205_v30 = vld [vmem:[#allocation5 + $0x3c8] sm:$0xff]  ;;  %v172_v32 = vld [vmem:[#allocation5 + $0x2c0] sm:$0xff]  ;;  %v187_v33 = vld [vmem:[#allocation5 + $0x338] sm:$0xff] }
  0x34   :  { %675 = vmatpush.msrb.mxu0 %v163_v62  ;;  %630 = vmatpush.msra.mxu1 %v100_v0  ;;  %v204_v34 = vld [vmem:[#allocation5 + $0x3c0] sm:$0xff]  ;;  %v154_v35 = vld [vmem:[#allocation5 + $0x230] sm:$0xff]  ;;  %v171_v36 = vld [vmem:[#allocation5 + $0x2b8] sm:$0xff] }
  0x35   :  { %715 = vmatpush.msrb.mxu2 %v195_v63  ;;  %670 = vmatpush.msra.mxu3 %v132_v1  ;;  %v186_v37 = vld [vmem:[#allocation5 + $0x330] sm:$0xff]  ;;  %v203_v38 = vld [vmem:[#allocation5 + $0x3b8] sm:$0xff]  ;;  %v153_v39 = vld [vmem:[#allocation5 + $0x228] sm:$0xff] }
  0x36   :  { %676 = vmatpush.msrb.mxu0 %v162_v2  ;;  %695 = vmatpush.msrb.mxu1 %v179_v3  ;;  %v170_v40 = vld [vmem:[#allocation5 + $0x2b0] sm:$0xff]  ;;  %v185_v41 = vld [vmem:[#allocation5 + $0x328] sm:$0xff]  ;;  %v152_v44 = vld [vmem:[#allocation5 + $0x220] sm:$0xff] }
  0x37   :  { %716 = vmatpush.msrb.mxu2 %v194_v4  ;;  %735 = vmatpush.msrb.mxu3 %v211_v5  ;;  %v202_v42 = vld [vmem:[#allocation5 + $0x3b0] sm:$0xff]  ;;  %v169_v45 = vld [vmem:[#allocation5 + $0x2a8] sm:$0xff]  ;;  %v79_v46 = vld [vmem:[#allocation2 + $0x10] sm:$0xff] }
  0x38   :  { %677 = vmatpush.msrb.mxu0 %v161_v6  ;;  %696 = vmatpush.msrb.mxu1 %v178_v7  ;;  %v78_v43 = vld [vmem:[#allocation2 + $0x8] sm:$0xff]  ;;  %v184_v47 = vld [vmem:[#allocation5 + $0x320] sm:$0xff]  ;;  %v201_v52 = vld [vmem:[#allocation5 + $0x3a8] sm:$0xff] }
  0x39   :  { %717 = vmatpush.msrb.mxu2 %v193_v8  ;;  %736 = vmatpush.msrb.mxu3 %v210_v9  ;;  %531 = vst [vmem:[#allocation1 + $0x20] ss:$4 sm:$0xff] %v78_v43  ;;  %v532_v48 = vld.sshfl [vmem:[#allocation1] sm:$0xff pattern:$0x73625140]  ;;  %v151_v53 = vld [vmem:[#allocation5 + $0x218] sm:$0xff] }
  0x3a   :  { %678 = vmatpush.msrb.mxu0 %v160_v10  ;;  %697 = vmatpush.msrb.mxu1 %v177_v11  ;;  %v534_v49 = vld.sshfl [vmem:[#allocation1 + $0x10] sm:$0xff pattern:$0x73625140]  ;;  %v1528_v50 = vld.sshfl [vmem:[#allocation1 + $0x8] sm:$0xff pattern:$0x73625140] }
  0x3b   :  { %718 = vmatpush.msrb.mxu2 %v192_v12  ;;  %737 = vmatpush.msrb.mxu3 %v209_v13  ;;  %v1530_v51 = vld.sshfl [vmem:[#allocation1 + $0x18] sm:$0xff pattern:$0x73625140]  ;;  %v168_v54 = vld [vmem:[#allocation5 + $0x2a0] sm:$0xff]  ;;  %v150_v57 = vld [vmem:[#allocation5 + $0x210] sm:$0xff] }
  0x3c   :  { %679 = vmatpush.msrb.mxu0 %v159_v14  ;;  %698 = vmatpush.msrb.mxu1 %v176_v15  ;;  %540 = vst [vmem:[#allocation1] ss:$4 sm:$0xff] %v79_v46  ;;  %v183_v55 = vld [vmem:[#allocation5 + $0x318] sm:$0xff]  ;;  %v200_v56 = vld [vmem:[#allocation5 + $0x3a0] sm:$0xff]  ;;  %v182_v59 = vld [vmem:[#allocation5 + $0x310] sm:$0xff] }
  0x3d   :  { %719 = vmatpush.msrb.mxu2 %v191_v16  ;;  %738 = vmatpush.msrb.mxu3 %v208_v17  ;;  %v167_v58 = vld [vmem:[#allocation5 + $0x298] sm:$0xff]  ;;  %v149_v61 = vld [vmem:[#allocation5 + $0x208] sm:$0xff]  ;;  %v166_v62 = vld [vmem:[#allocation5 + $0x290] sm:$0xff] }
  0x3e   :  { %680 = vmatpush.msrb.mxu0 %v158_v18  ;;  %699 = vmatpush.msrb.mxu1 %v175_v19  ;;  %v199_v60 = vld [vmem:[#allocation5 + $0x398] sm:$0xff]  ;;  %v80_v63 = vld [vmem:[#allocation2 + $0x18] sm:$0xff]  ;;  %v181_v4 = vld [vmem:[#allocation5 + $0x308] sm:$0xff] }
  0x3f   :  { %720 = vmatpush.msrb.mxu2 %v190_v20  ;;  %739 = vmatpush.msrb.mxu3 %v207_v21  ;;  %v198_v5 = vld [vmem:[#allocation5 + $0x390] sm:$0xff]  ;;  %v148_v6 = vld [vmem:[#allocation5 + $0x200] sm:$0xff]  ;;  %v165_v7 = vld [vmem:[#allocation5 + $0x288] sm:$0xff] }
  0x40   :  { %681 = vmatpush.msrb.mxu0 %v157_v22  ;;  %700 = vmatpush.msrb.mxu1 %v174_v23  ;;  %v1532_v0 = vld.sshfl [vmem:[#allocation1 + $0x30] sm:$0xff pattern:$0x73625140]  ;;  %v1534_v1 = vld.sshfl [vmem:[#allocation1 + $0x20] sm:$0xff pattern:$0x73625140] }
  0x41   :  { %721 = vmatpush.msrb.mxu2 %v189_v24  ;;  %740 = vmatpush.msrb.mxu3 %v206_v25  ;;  %v1536_v2 = vld.sshfl [vmem:[#allocation1 + $0x38] sm:$0xff pattern:$0x73625140]  ;;  %v1538_v3 = vld.sshfl [vmem:[#allocation1 + $0x28] sm:$0xff pattern:$0x73625140] }
  0x42   :  { %682 = vmatpush.msrb.mxu0 %v156_v27  ;;  %701 = vmatpush.msrb.mxu1 %v173_v28  ;;  %541 = vst [vmem:[#allocation1 + $0x20] ss:$4 sm:$0xff] %v80_v63  ;;  %v180_v8 = vld [vmem:[#allocation5 + $0x300] sm:$0xff]  ;;  %v197_v9 = vld [vmem:[#allocation5 + $0x388] sm:$0xff]  ;;  %v227_v10 = vld [vmem:[#allocation5 + $0x478] sm:$0xff] }
  0x43   :  { %722 = vmatpush.msrb.mxu2 %v188_v29  ;;  %741 = vmatpush.msrb.mxu3 %v205_v30  ;;  %v259_v11 = vld [vmem:[#allocation5 + $0x578] sm:$0xff]  ;;  %v164_v12 = vld [vmem:[#allocation5 + $0x280] sm:$0xff]  ;;  %v226_v14 = vld [vmem:[#allocation5 + $0x470] sm:$0xff] }
  0x44   :  { %683 = vmatpush.msrb.mxu0 %v155_v31  ;;  %702 = vmatpush.msrb.mxu1 %v172_v32  ;;  %v196_v13 = vld [vmem:[#allocation5 + $0x380] sm:$0xff]  ;;  %v243_v15 = vld [vmem:[#allocation5 + $0x4f8] sm:$0xff]  ;;  %v258_v16 = vld [vmem:[#allocation5 + $0x570] sm:$0xff] }
  0x45   :  { %723 = vmatpush.msrb.mxu2 %v187_v33  ;;  %742 = vmatpush.msrb.mxu3 %v204_v34  ;;  %v275_v17 = vld [vmem:[#allocation5 + $0x5f8] sm:$0xff]  ;;  %v225_v18 = vld [vmem:[#allocation5 + $0x468] sm:$0xff]  ;;  %v242_v19 = vld [vmem:[#allocation5 + $0x4f0] sm:$0xff] }
  0x46   :  { %684 = vmatpush.msrb.mxu0 %v154_v35  ;;  %703 = vmatpush.msrb.mxu1 %v171_v36  ;;  %v257_v20 = vld [vmem:[#allocation5 + $0x568] sm:$0xff]  ;;  %v274_v21 = vld [vmem:[#allocation5 + $0x5f0] sm:$0xff]  ;;  %v224_v22 = vld [vmem:[#allocation5 + $0x460] sm:$0xff] }
  0x47   :  { %724 = vmatpush.msrb.mxu2 %v186_v37  ;;  %743 = vmatpush.msrb.mxu3 %v203_v38  ;;  %v241_v23 = vld [vmem:[#allocation5 + $0x4e8] sm:$0xff]  ;;  %v256_v24 = vld [vmem:[#allocation5 + $0x560] sm:$0xff]  ;;  %v1544_v27 = vld.sshfl [vmem:[#allocation1 + $0x10] sm:$0xff pattern:$0x73625140] }
  0x48   :  { %685 = vmatpush.msrb.mxu0 %v153_v39  ;;  %704 = vmatpush.msrb.mxu1 %v170_v40  ;;  %v273_v25 = vld [vmem:[#allocation5 + $0x5e8] sm:$0xff]  ;;  %v1542_v26 = vld.sshfl [vmem:[#allocation1] sm:$0xff pattern:$0x73625140]  ;;  %v223_v29 = vld [vmem:[#allocation5 + $0x458] sm:$0xff] }
  0x49   :  { %725 = vmatpush.msrb.mxu2 %v185_v41  ;;  %744 = vmatpush.msrb.mxu3 %v202_v42  ;;  %v1546_v28 = vld.sshfl [vmem:[#allocation1 + $0x8] sm:$0xff pattern:$0x73625140]  ;;  %v1548_v31 = vld.sshfl [vmem:[#allocation1 + $0x18] sm:$0xff pattern:$0x73625140] }
  0x4a   :  { %686 = vmatpush.msrb.mxu0 %v152_v44  ;;  %705 = vmatpush.msrb.mxu1 %v169_v45  ;;  %v81_v30 = vld [vmem:[#allocation2 + $0x20] sm:$0xff]  ;;  %v240_v32 = vld [vmem:[#allocation5 + $0x4e0] sm:$0xff]  ;;  %v255_v33 = vld [vmem:[#allocation5 + $0x558] sm:$0xff] }
  0x4b   :  { %726 = vmatpush.msrb.mxu2 %v184_v47  ;;  %745 = vmatpush.msrb.mxu3 %v201_v52  ;;  %550 = vst [vmem:[#allocation1] ss:$4 sm:$0xff] %v81_v30  ;;  %v272_v34 = vld [vmem:[#allocation5 + $0x5e0] sm:$0xff]  ;;  %v222_v35 = vld [vmem:[#allocation5 + $0x450] sm:$0xff]  ;;  %v239_v36 = vld [vmem:[#allocation5 + $0x4d8] sm:$0xff] }
  0x4c   :  { %687 = vmatpush.msrb.mxu0 %v151_v53  ;;  %706 = vmatpush.msrb.mxu1 %v168_v54  ;;  %v254_v37 = vld [vmem:[#allocation5 + $0x550] sm:$0xff]  ;;  %v271_v38 = vld [vmem:[#allocation5 + $0x5d8] sm:$0xff]  ;;  %v221_v39 = vld [vmem:[#allocation5 + $0x448] sm:$0xff] }
  0x4d   :  { %727 = vmatpush.msrb.mxu2 %v183_v55  ;;  %746 = vmatpush.msrb.mxu3 %v200_v56  ;;  %v238_v40 = vld [vmem:[#allocation5 + $0x4d0] sm:$0xff]  ;;  %v253_v41 = vld [vmem:[#allocation5 + $0x548] sm:$0xff]  ;;  %v220_v43 = vld [vmem:[#allocation5 + $0x440] sm:$0xff] }
  0x4e   :  { %688 = vmatpush.msrb.mxu0 %v150_v57  ;;  %707 = vmatpush.msrb.mxu1 %v167_v58  ;;  %v270_v42 = vld [vmem:[#allocation5 + $0x5d0] sm:$0xff]  ;;  %v237_v44 = vld [vmem:[#allocation5 + $0x4c8] sm:$0xff]  ;;  %v252_v45 = vld [vmem:[#allocation5 + $0x540] sm:$0xff] }
  0x4f   :  { %728 = vmatpush.msrb.mxu2 %v182_v59  ;;  %747 = vmatpush.msrb.mxu3 %v199_v60  ;;  %v269_v46 = vld [vmem:[#allocation5 + $0x5c8] sm:$0xff]  ;;  %v219_v47 = vld [vmem:[#allocation5 + $0x438] sm:$0xff]  ;;  %v250_v53 = vld [vmem:[#allocation5 + $0x530] sm:$0xff] }
  0x50   :  { %689 = vmatpush.msrb.mxu0 %v149_v61  ;;  %708 = vmatpush.msrb.mxu1 %v166_v62  ;;  %v235_v52 = vld [vmem:[#allocation5 + $0x4b8] sm:$0xff]  ;;  %v217_v55 = vld [vmem:[#allocation5 + $0x428] sm:$0xff]  ;;  %v234_v56 = vld [vmem:[#allocation5 + $0x4b0] sm:$0xff] }
  0x51   :  { %729 = vmatpush.msrb.mxu2 %v181_v4  ;;  %748 = vmatpush.msrb.mxu3 %v198_v5  ;;  %v267_v54 = vld [vmem:[#allocation5 + $0x5b8] sm:$0xff]  ;;  %v249_v57 = vld [vmem:[#allocation5 + $0x528] sm:$0xff]  ;;  %v266_v58 = vld [vmem:[#allocation5 + $0x5b0] sm:$0xff] }
  0x52   :  { %690 = vmatpush.msrb.mxu0 %v148_v6  ;;  %709 = vmatpush.msrb.mxu1 %v165_v7  ;;  %v216_v59 = vld [vmem:[#allocation5 + $0x420] sm:$0xff]  ;;  %v233_v60 = vld [vmem:[#allocation5 + $0x4a8] sm:$0xff]  ;;  %v215_v63 = vld [vmem:[#allocation5 + $0x418] sm:$0xff] }
  0x53   :  { %730 = vmatpush.msrb.mxu2 %v180_v8  ;;  %749 = vmatpush.msrb.mxu3 %v197_v9  ;;  %v248_v61 = vld [vmem:[#allocation5 + $0x520] sm:$0xff]  ;;  %v265_v62 = vld [vmem:[#allocation5 + $0x5a8] sm:$0xff]  ;;  %v231_v4 = vld [vmem:[#allocation5 + $0x498] sm:$0xff] }
  0x54   :  { %611 = vmatmul.f32.vlgmr.msra.gmra.mxu0 %v532_v48  ;;  %651 = vmatmul.f32.vlgmr.msra.gmra.mxu2 %v534_v49  ;;  %v236_v48 = vld [vmem:[#allocation5 + $0x4c0] sm:$0xff]  ;;  %v251_v49 = vld [vmem:[#allocation5 + $0x538] sm:$0xff]  ;;  %v246_v5 = vld [vmem:[#allocation5 + $0x510] sm:$0xff] }
  0x55   :  { %755 = vmatpush.msra.mxu0 %v227_v10  ;;  %795 = vmatpush.msra.mxu2 %v259_v11  ;;  %v263_v6 = vld [vmem:[#allocation5 + $0x598] sm:$0xff]  ;;  %v213_v7 = vld [vmem:[#allocation5 + $0x408] sm:$0xff]  ;;  %v230_v8 = vld [vmem:[#allocation5 + $0x490] sm:$0xff] }
  0x56   :  { %710 = vmatpush.msrb.mxu1 %v164_v12  ;;  %750 = vmatpush.msrb.mxu3 %v196_v13  ;;  %v245_v9 = vld [vmem:[#allocation5 + $0x508] sm:$0xff]  ;;  %v262_v10 = vld [vmem:[#allocation5 + $0x590] sm:$0xff]  ;;  %v212_v11 = vld [vmem:[#allocation5 + $0x400] sm:$0xff] }
  0x57   :  { %631 = vmatmul.f32.vlgmr.msra.gmra.mxu1 %v1528_v50  ;;  %671 = vmatmul.f32.vlgmr.msra.gmra.mxu3 %v1530_v51  ;;  %v268_v50 = vld [vmem:[#allocation5 + $0x5c0] sm:$0xff]  ;;  %v218_v51 = vld [vmem:[#allocation5 + $0x430] sm:$0xff]  ;;  %v229_v12 = vld [vmem:[#allocation5 + $0x488] sm:$0xff] }
  0x58   :  { %756 = vmatpush.msra.mxu0 %v226_v14  ;;  %775 = vmatpush.msra.mxu1 %v243_v15  ;;  %v244_v13 = vld [vmem:[#allocation5 + $0x500] sm:$0xff]  ;;  %v261_v14 = vld [vmem:[#allocation5 + $0x588] sm:$0xff]  ;;  %v291_v15 = vld [vmem:[#allocation5 + $0x678] sm:$0xff] }
  0x59   :  { %796 = vmatpush.msra.mxu2 %v258_v16  ;;  %815 = vmatpush.msra.mxu3 %v275_v17  ;;  %v323_v16 = vld [vmem:[#allocation5 + $0x778] sm:$0xff]  ;;  %v228_v17 = vld [vmem:[#allocation5 + $0x480] sm:$0xff] }
  0x5a   :  { %757 = vmatpush.msra.mxu0 %v225_v18  ;;  %776 = vmatpush.msra.mxu1 %v242_v19  ;;  %v260_v18 = vld [vmem:[#allocation5 + $0x580] sm:$0xff]  ;;  %v290_v19 = vld [vmem:[#allocation5 + $0x670] sm:$0xff] }
  0x5b   :  { %797 = vmatpush.msra.mxu2 %v257_v20  ;;  %816 = vmatpush.msra.mxu3 %v274_v21  ;;  %v307_v20 = vld [vmem:[#allocation5 + $0x6f8] sm:$0xff]  ;;  %v322_v21 = vld [vmem:[#allocation5 + $0x770] sm:$0xff]  ;;  %v288_v30 = vld [vmem:[#allocation5 + $0x660] sm:$0xff] }
  0x5c   :  { %758 = vmatpush.msra.mxu0 %v224_v22  ;;  %777 = vmatpush.msra.mxu1 %v241_v23  ;;  %v339_v22 = vld [vmem:[#allocation5 + $0x7f8] sm:$0xff]  ;;  %v289_v23 = vld [vmem:[#allocation5 + $0x668] sm:$0xff] }
  0x5d   :  { %798 = vmatpush.msra.mxu2 %v256_v24  ;;  %817 = vmatpush.msra.mxu3 %v273_v25  ;;  %v306_v24 = vld [vmem:[#allocation5 + $0x6f0] sm:$0xff]  ;;  %v321_v25 = vld [vmem:[#allocation5 + $0x768] sm:$0xff] }
  0x5e   :  { %731 = vmatmul.f32.vlgmr.msrb.gmra.mxu2 %v1532_v0  ;;  %759 = vmatpush.msra.mxu0 %v223_v29  ;;  %v232_v0 = vld [vmem:[#allocation5 + $0x4a0] sm:$0xff]  ;;  %v338_v29 = vld [vmem:[#allocation5 + $0x7f0] sm:$0xff] }
  0x5f   :  { %778 = vmatpush.msra.mxu1 %v240_v32  ;;  %799 = vmatpush.msra.mxu2 %v255_v33  ;;  %v1562_v32 = vld.sshfl [vmem:[#allocation1 + $0x28] sm:$0xff pattern:$0x73625140] }
  0x60   :  { %818 = vmatpush.msra.mxu3 %v272_v34  ;;  %691 = vmatmul.f32.vlgmr.msrb.gmra.mxu0 %v1534_v1  ;;  %v247_v1 = vld [vmem:[#allocation5 + $0x518] sm:$0xff]  ;;  %v305_v33 = vld [vmem:[#allocation5 + $0x6e8] sm:$0xff]  ;;  %v82_v34 = vld [vmem:[#allocation2 + $0x28] sm:$0xff] }
  0x61   :  { %751 = vmatmul.f32.vlgmr.msrb.gmra.mxu3 %v1536_v2  ;;  %760 = vmatpush.msra.mxu0 %v222_v35  ;;  %v264_v2 = vld [vmem:[#allocation5 + $0x5a0] sm:$0xff]  ;;  %v1564_v35 = vld.sshfl [vmem:[#allocation1 + $0x38] sm:$0xff pattern:$0x73625140] }
  0x62   :  { %779 = vmatpush.msra.mxu1 %v239_v36  ;;  %800 = vmatpush.msra.mxu2 %v254_v37  ;;  %v287_v36 = vld [vmem:[#allocation5 + $0x658] sm:$0xff]  ;;  %v304_v37 = vld [vmem:[#allocation5 + $0x6e0] sm:$0xff] }
  0x63   :  { %819 = vmatpush.msra.mxu3 %v271_v38  ;;  %711 = vmatmul.f32.vlgmr.msrb.gmra.mxu1 %v1538_v3  ;;  %v214_v3 = vld [vmem:[#allocation5 + $0x410] sm:$0xff]  ;;  %v319_v38 = vld [vmem:[#allocation5 + $0x758] sm:$0xff] }
  0x64   :  { %761 = vmatpush.msra.mxu0 %v221_v39  ;;  %780 = vmatpush.msra.mxu1 %v238_v40  ;;  %v336_v39 = vld [vmem:[#allocation5 + $0x7e0] sm:$0xff]  ;;  %v286_v40 = vld [vmem:[#allocation5 + $0x650] sm:$0xff] }
  0x65   :  { %801 = vmatpush.msra.mxu2 %v253_v41  ;;  %820 = vmatpush.msra.mxu3 %v270_v42  ;;  %v303_v41 = vld [vmem:[#allocation5 + $0x6d8] sm:$0xff]  ;;  %v318_v42 = vld [vmem:[#allocation5 + $0x750] sm:$0xff] }
  0x66   :  { %762 = vmatpush.msra.mxu0 %v220_v43  ;;  %781 = vmatpush.msra.mxu1 %v237_v44  ;;  %v335_v43 = vld [vmem:[#allocation5 + $0x7d8] sm:$0xff]  ;;  %v285_v44 = vld [vmem:[#allocation5 + $0x648] sm:$0xff] }
  0x67   :  { %802 = vmatpush.msra.mxu2 %v252_v45  ;;  %821 = vmatpush.msra.mxu3 %v269_v46  ;;  %v302_v45 = vld [vmem:[#allocation5 + $0x6d0] sm:$0xff]  ;;  %v317_v46 = vld [vmem:[#allocation5 + $0x748] sm:$0xff] }
  0x68   :  { %763 = vmatpush.msra.mxu0 %v219_v47  ;;  %782 = vmatpush.msra.mxu1 %v236_v48  ;;  %v334_v47 = vld [vmem:[#allocation5 + $0x7d0] sm:$0xff]  ;;  %v284_v48 = vld [vmem:[#allocation5 + $0x640] sm:$0xff] }
  0x69   :  { %803 = vmatpush.msra.mxu2 %v251_v49  ;;  %822 = vmatpush.msra.mxu3 %v268_v50  ;;  %v301_v49 = vld [vmem:[#allocation5 + $0x6c8] sm:$0xff]  ;;  %v316_v50 = vld [vmem:[#allocation5 + $0x740] sm:$0xff] }
  0x6a   :  { %764 = vmatpush.msra.mxu0 %v218_v51  ;;  %783 = vmatpush.msra.mxu1 %v235_v52  ;;  %v333_v51 = vld [vmem:[#allocation5 + $0x7c8] sm:$0xff]  ;;  %v283_v52 = vld [vmem:[#allocation5 + $0x638] sm:$0xff] }
  0x6b   :  { %804 = vmatpush.msra.mxu2 %v250_v53  ;;  %823 = vmatpush.msra.mxu3 %v267_v54  ;;  %v300_v53 = vld [vmem:[#allocation5 + $0x6c0] sm:$0xff]  ;;  %v315_v54 = vld [vmem:[#allocation5 + $0x738] sm:$0xff] }
  0x6c   :  { %765 = vmatpush.msra.mxu0 %v217_v55  ;;  %784 = vmatpush.msra.mxu1 %v234_v56  ;;  %v332_v55 = vld [vmem:[#allocation5 + $0x7c0] sm:$0xff]  ;;  %v282_v56 = vld [vmem:[#allocation5 + $0x630] sm:$0xff] }
  0x6d   :  { %805 = vmatpush.msra.mxu2 %v249_v57  ;;  %824 = vmatpush.msra.mxu3 %v266_v58  ;;  %v299_v57 = vld [vmem:[#allocation5 + $0x6b8] sm:$0xff]  ;;  %v314_v58 = vld [vmem:[#allocation5 + $0x730] sm:$0xff] }
  0x6e   :  { %766 = vmatpush.msra.mxu0 %v216_v59  ;;  %785 = vmatpush.msra.mxu1 %v233_v60  ;;  %v331_v59 = vld [vmem:[#allocation5 + $0x7b8] sm:$0xff]  ;;  %v281_v60 = vld [vmem:[#allocation5 + $0x628] sm:$0xff] }
  0x6f   :  { %806 = vmatpush.msra.mxu2 %v248_v61  ;;  %825 = vmatpush.msra.mxu3 %v265_v62  ;;  %v298_v61 = vld [vmem:[#allocation5 + $0x6b0] sm:$0xff]  ;;  %v313_v62 = vld [vmem:[#allocation5 + $0x728] sm:$0xff] }
  0x70   :  { %767 = vmatpush.msra.mxu0 %v215_v63  ;;  %786 = vmatpush.msra.mxu1 %v232_v0  ;;  %v330_v63 = vld [vmem:[#allocation5 + $0x7b0] sm:$0xff]  ;;  %v280_v0 = vld [vmem:[#allocation5 + $0x620] sm:$0xff] }
  0x71   :  { %807 = vmatpush.msra.mxu2 %v247_v1  ;;  %826 = vmatpush.msra.mxu3 %v264_v2  ;;  %v297_v1 = vld [vmem:[#allocation5 + $0x6a8] sm:$0xff]  ;;  %v312_v2 = vld [vmem:[#allocation5 + $0x720] sm:$0xff] }
  0x72   :  { %768 = vmatpush.msra.mxu0 %v214_v3  ;;  %787 = vmatpush.msra.mxu1 %v231_v4  ;;  %v329_v3 = vld [vmem:[#allocation5 + $0x7a8] sm:$0xff]  ;;  %v279_v4 = vld [vmem:[#allocation5 + $0x618] sm:$0xff] }
  0x73   :  { %808 = vmatpush.msra.mxu2 %v246_v5  ;;  %827 = vmatpush.msra.mxu3 %v263_v6  ;;  %v296_v5 = vld [vmem:[#allocation5 + $0x6a0] sm:$0xff]  ;;  %v311_v6 = vld [vmem:[#allocation5 + $0x718] sm:$0xff] }
  0x74   :  { %769 = vmatpush.msra.mxu0 %v213_v7  ;;  %788 = vmatpush.msra.mxu1 %v230_v8  ;;  %v328_v7 = vld [vmem:[#allocation5 + $0x7a0] sm:$0xff]  ;;  %v278_v8 = vld [vmem:[#allocation5 + $0x610] sm:$0xff] }
  0x75   :  { %809 = vmatpush.msra.mxu2 %v245_v9  ;;  %828 = vmatpush.msra.mxu3 %v262_v10  ;;  %v295_v9 = vld [vmem:[#allocation5 + $0x698] sm:$0xff]  ;;  %v310_v10 = vld [vmem:[#allocation5 + $0x710] sm:$0xff] }
  0x76   :  { %770 = vmatpush.msra.mxu0 %v212_v11  ;;  %789 = vmatpush.msra.mxu1 %v229_v12  ;;  %v327_v11 = vld [vmem:[#allocation5 + $0x798] sm:$0xff]  ;;  %v277_v12 = vld [vmem:[#allocation5 + $0x608] sm:$0xff] }
  0x77   :  { %810 = vmatpush.msra.mxu2 %v244_v13  ;;  %829 = vmatpush.msra.mxu3 %v261_v14  ;;  %v294_v13 = vld [vmem:[#allocation5 + $0x690] sm:$0xff]  ;;  %v309_v14 = vld [vmem:[#allocation5 + $0x708] sm:$0xff] }
  0x78   :  { %771 = vmatmul.f32.vlgmr.msra.gmra.mxu0 %v1542_v26  ;;  %811 = vmatmul.f32.vlgmr.msra.gmra.mxu2 %v1544_v27  ;;  %v1558_v26 = vld.sshfl [vmem:[#allocation1 + $0x20] sm:$0xff pattern:$0x73625140]  ;;  %v1560_v27 = vld.sshfl [vmem:[#allocation1 + $0x30] sm:$0xff pattern:$0x73625140] }
  0x79   :  { %835 = vmatpush.msrb.mxu0 %v291_v15  ;;  %875 = vmatpush.msrb.mxu2 %v323_v16  ;;  %551 = vst [vmem:[#allocation1 + $0x20] ss:$4 sm:$0xff] %v82_v34  ;;  %v326_v15 = vld [vmem:[#allocation5 + $0x790] sm:$0xff]  ;;  %v276_v16 = vld [vmem:[#allocation5 + $0x600] sm:$0xff] }
  0x7a   :  { %790 = vmatpush.msra.mxu1 %v228_v17  ;;  %830 = vmatpush.msra.mxu3 %v260_v18  ;;  %v293_v17 = vld [vmem:[#allocation5 + $0x688] sm:$0xff]  ;;  %v308_v18 = vld [vmem:[#allocation5 + $0x700] sm:$0xff]  ;;  %v370_v34 = vld [vmem:[#allocation5 + $0x8f0] sm:$0xff] }
  0x7b   :  { %791 = vmatmul.f32.vlgmr.msra.gmra.mxu1 %v1546_v28  ;;  %831 = vmatmul.f32.vlgmr.msra.gmra.mxu3 %v1548_v31  ;;  %v320_v28 = vld [vmem:[#allocation5 + $0x760] sm:$0xff]  ;;  %v337_v31 = vld [vmem:[#allocation5 + $0x7e8] sm:$0xff] }
  0x7c   :  { %836 = vmatpush.msrb.mxu0 %v290_v19  ;;  %855 = vmatpush.msrb.mxu1 %v307_v20  ;;  %v325_v19 = vld [vmem:[#allocation5 + $0x788] sm:$0xff]  ;;  %v355_v20 = vld [vmem:[#allocation5 + $0x878] sm:$0xff] }
  0x7d   :  { %876 = vmatpush.msrb.mxu2 %v322_v21  ;;  %895 = vmatpush.msrb.mxu3 %v339_v22  ;;  %v387_v21 = vld [vmem:[#allocation5 + $0x978] sm:$0xff]  ;;  %v292_v22 = vld [vmem:[#allocation5 + $0x680] sm:$0xff] }
  0x7e   :  { %837 = vmatpush.msrb.mxu0 %v289_v23  ;;  %856 = vmatpush.msrb.mxu1 %v306_v24  ;;  %v324_v23 = vld [vmem:[#allocation5 + $0x780] sm:$0xff]  ;;  %v354_v24 = vld [vmem:[#allocation5 + $0x870] sm:$0xff] }
  0x7f   :  { %877 = vmatpush.msrb.mxu2 %v321_v25  ;;  %896 = vmatpush.msrb.mxu3 %v338_v29  ;;  %v371_v25 = vld [vmem:[#allocation5 + $0x8f8] sm:$0xff]  ;;  %v386_v29 = vld [vmem:[#allocation5 + $0x970] sm:$0xff] }
  0x80   :  { %838 = vmatpush.msrb.mxu0 %v288_v30  ;;  %857 = vmatpush.msrb.mxu1 %v305_v33  ;;  %v403_v30 = vld [vmem:[#allocation5 + $0x9f8] sm:$0xff]  ;;  %v353_v33 = vld [vmem:[#allocation5 + $0x868] sm:$0xff] }
  0x81   :  { %878 = vmatpush.msrb.mxu2 %v320_v28  ;;  %897 = vmatpush.msrb.mxu3 %v337_v31  ;;  %v385_v28 = vld [vmem:[#allocation5 + $0x968] sm:$0xff] }
  0x82   :  { %839 = vmatpush.msrb.mxu0 %v287_v36  ;;  %858 = vmatpush.msrb.mxu1 %v304_v37  ;;  %v369_v31 = vld [vmem:[#allocation5 + $0x8e8] sm:$0xff]  ;;  %v384_v36 = vld [vmem:[#allocation5 + $0x960] sm:$0xff] }
  0x83   :  { %879 = vmatpush.msrb.mxu2 %v319_v38  ;;  %898 = vmatpush.msrb.mxu3 %v336_v39  ;;  %v401_v37 = vld [vmem:[#allocation5 + $0x9e8] sm:$0xff]  ;;  %v351_v38 = vld [vmem:[#allocation5 + $0x858] sm:$0xff]  ;;  %v400_v39 = vld [vmem:[#allocation5 + $0x9e0] sm:$0xff] }
  0x84   :  { %840 = vmatpush.msrb.mxu0 %v286_v40  ;;  %859 = vmatpush.msrb.mxu1 %v303_v41  ;;  %v350_v40 = vld [vmem:[#allocation5 + $0x850] sm:$0xff]  ;;  %v367_v41 = vld [vmem:[#allocation5 + $0x8d8] sm:$0xff] }
  0x85   :  { %880 = vmatpush.msrb.mxu2 %v318_v42  ;;  %899 = vmatpush.msrb.mxu3 %v335_v43  ;;  %v382_v42 = vld [vmem:[#allocation5 + $0x950] sm:$0xff]  ;;  %v399_v43 = vld [vmem:[#allocation5 + $0x9d8] sm:$0xff] }
  0x86   :  { %841 = vmatpush.msrb.mxu0 %v285_v44  ;;  %860 = vmatpush.msrb.mxu1 %v302_v45  ;;  %v349_v44 = vld [vmem:[#allocation5 + $0x848] sm:$0xff]  ;;  %v366_v45 = vld [vmem:[#allocation5 + $0x8d0] sm:$0xff] }
  0x87   :  { %881 = vmatpush.msrb.mxu2 %v317_v46  ;;  %900 = vmatpush.msrb.mxu3 %v334_v47  ;;  %v381_v46 = vld [vmem:[#allocation5 + $0x948] sm:$0xff]  ;;  %v398_v47 = vld [vmem:[#allocation5 + $0x9d0] sm:$0xff] }
  0x88   :  { %842 = vmatpush.msrb.mxu0 %v284_v48  ;;  %861 = vmatpush.msrb.mxu1 %v301_v49  ;;  %v348_v48 = vld [vmem:[#allocation5 + $0x840] sm:$0xff]  ;;  %v365_v49 = vld [vmem:[#allocation5 + $0x8c8] sm:$0xff] }
  0x89   :  { %882 = vmatpush.msrb.mxu2 %v316_v50  ;;  %901 = vmatpush.msrb.mxu3 %v333_v51  ;;  %v380_v50 = vld [vmem:[#allocation5 + $0x940] sm:$0xff]  ;;  %v397_v51 = vld [vmem:[#allocation5 + $0x9c8] sm:$0xff] }
  0x8a   :  { %843 = vmatpush.msrb.mxu0 %v283_v52  ;;  %862 = vmatpush.msrb.mxu1 %v300_v53  ;;  %v347_v52 = vld [vmem:[#allocation5 + $0x838] sm:$0xff]  ;;  %v364_v53 = vld [vmem:[#allocation5 + $0x8c0] sm:$0xff] }
  0x8b   :  { %883 = vmatpush.msrb.mxu2 %v315_v54  ;;  %902 = vmatpush.msrb.mxu3 %v332_v55  ;;  %v379_v54 = vld [vmem:[#allocation5 + $0x938] sm:$0xff]  ;;  %v396_v55 = vld [vmem:[#allocation5 + $0x9c0] sm:$0xff] }
  0x8c   :  { %844 = vmatpush.msrb.mxu0 %v282_v56  ;;  %863 = vmatpush.msrb.mxu1 %v299_v57  ;;  %v346_v56 = vld [vmem:[#allocation5 + $0x830] sm:$0xff]  ;;  %v363_v57 = vld [vmem:[#allocation5 + $0x8b8] sm:$0xff] }
  0x8d   :  { %884 = vmatpush.msrb.mxu2 %v314_v58  ;;  %903 = vmatpush.msrb.mxu3 %v331_v59  ;;  %v378_v58 = vld [vmem:[#allocation5 + $0x930] sm:$0xff]  ;;  %v395_v59 = vld [vmem:[#allocation5 + $0x9b8] sm:$0xff] }
  0x8e   :  { %845 = vmatpush.msrb.mxu0 %v281_v60  ;;  %864 = vmatpush.msrb.mxu1 %v298_v61  ;;  %v345_v60 = vld [vmem:[#allocation5 + $0x828] sm:$0xff]  ;;  %v362_v61 = vld [vmem:[#allocation5 + $0x8b0] sm:$0xff] }
  0x8f   :  { %885 = vmatpush.msrb.mxu2 %v313_v62  ;;  %904 = vmatpush.msrb.mxu3 %v330_v63  ;;  %v377_v62 = vld [vmem:[#allocation5 + $0x928] sm:$0xff]  ;;  %v394_v63 = vld [vmem:[#allocation5 + $0x9b0] sm:$0xff] }
  0x90   :  { %846 = vmatpush.msrb.mxu0 %v280_v0  ;;  %865 = vmatpush.msrb.mxu1 %v297_v1  ;;  %v344_v0 = vld [vmem:[#allocation5 + $0x820] sm:$0xff]  ;;  %v361_v1 = vld [vmem:[#allocation5 + $0x8a8] sm:$0xff] }
  0x91   :  { %886 = vmatpush.msrb.mxu2 %v312_v2  ;;  %905 = vmatpush.msrb.mxu3 %v329_v3  ;;  %v376_v2 = vld [vmem:[#allocation5 + $0x920] sm:$0xff]  ;;  %v393_v3 = vld [vmem:[#allocation5 + $0x9a8] sm:$0xff] }
  0x92   :  { %847 = vmatpush.msrb.mxu0 %v279_v4  ;;  %866 = vmatpush.msrb.mxu1 %v296_v5  ;;  %v343_v4 = vld [vmem:[#allocation5 + $0x818] sm:$0xff]  ;;  %v360_v5 = vld [vmem:[#allocation5 + $0x8a0] sm:$0xff] }
  0x93   :  { %887 = vmatpush.msrb.mxu2 %v311_v6  ;;  %906 = vmatpush.msrb.mxu3 %v328_v7  ;;  %v375_v6 = vld [vmem:[#allocation5 + $0x918] sm:$0xff]  ;;  %v392_v7 = vld [vmem:[#allocation5 + $0x9a0] sm:$0xff] }
  0x94   :  { %848 = vmatpush.msrb.mxu0 %v278_v8  ;;  %867 = vmatpush.msrb.mxu1 %v295_v9  ;;  %v342_v8 = vld [vmem:[#allocation5 + $0x810] sm:$0xff]  ;;  %v359_v9 = vld [vmem:[#allocation5 + $0x898] sm:$0xff] }
  0x95   :  { %888 = vmatpush.msrb.mxu2 %v310_v10  ;;  %907 = vmatpush.msrb.mxu3 %v327_v11  ;;  %v374_v10 = vld [vmem:[#allocation5 + $0x910] sm:$0xff]  ;;  %v391_v11 = vld [vmem:[#allocation5 + $0x998] sm:$0xff] }
  0x96   :  { %849 = vmatpush.msrb.mxu0 %v277_v12  ;;  %868 = vmatpush.msrb.mxu1 %v294_v13  ;;  %v341_v12 = vld [vmem:[#allocation5 + $0x808] sm:$0xff]  ;;  %v358_v13 = vld [vmem:[#allocation5 + $0x890] sm:$0xff] }
  0x97   :  { %889 = vmatpush.msrb.mxu2 %v309_v14  ;;  %908 = vmatpush.msrb.mxu3 %v326_v15  ;;  %v373_v14 = vld [vmem:[#allocation5 + $0x908] sm:$0xff]  ;;  %v390_v15 = vld [vmem:[#allocation5 + $0x990] sm:$0xff] }
  0x98   :  { %850 = vmatpush.msrb.mxu0 %v276_v16  ;;  %869 = vmatpush.msrb.mxu1 %v293_v17  ;;  %v340_v16 = vld [vmem:[#allocation5 + $0x800] sm:$0xff]  ;;  %v357_v17 = vld [vmem:[#allocation5 + $0x888] sm:$0xff] }
  0x99   :  { %890 = vmatpush.msrb.mxu2 %v308_v18  ;;  %909 = vmatpush.msrb.mxu3 %v325_v19  ;;  %v372_v18 = vld [vmem:[#allocation5 + $0x900] sm:$0xff]  ;;  %v389_v19 = vld [vmem:[#allocation5 + $0x988] sm:$0xff] }
  0x9a   :  { %851 = vmatmul.f32.vlgmr.msrb.gmra.mxu0 %v1558_v26  ;;  %891 = vmatmul.f32.vlgmr.msrb.gmra.mxu2 %v1560_v27  ;;  %v402_v26 = vld [vmem:[#allocation5 + $0x9f0] sm:$0xff]  ;;  %v352_v27 = vld [vmem:[#allocation5 + $0x860] sm:$0xff] }
  0x9b   :  { %915 = vmatpush.msra.mxu0 %v355_v20  ;;  %955 = vmatpush.msra.mxu2 %v387_v21  ;;  %v552_v20 = vld.sshfl [vmem:[#allocation1] sm:$0xff pattern:$0x73625140]  ;;  %v554_v21 = vld.sshfl [vmem:[#allocation1 + $0x10] sm:$0xff pattern:$0x73625140] }
  0x9c   :  { %870 = vmatpush.msrb.mxu1 %v292_v22  ;;  %910 = vmatpush.msrb.mxu3 %v324_v23  ;;  %v419_v22 = vld [vmem:[#allocation5 + $0xa78] sm:$0xff] }
  0x9d   :  { %871 = vmatmul.f32.vlgmr.msrb.gmra.mxu1 %v1562_v32  ;;  %911 = vmatmul.f32.vlgmr.msrb.gmra.mxu3 %v1564_v35  ;;  %v368_v32 = vld [vmem:[#allocation5 + $0x8e0] sm:$0xff]  ;;  %v383_v35 = vld [vmem:[#allocation5 + $0x958] sm:$0xff] }
  0x9e   :  { %916 = vmatpush.msra.mxu0 %v354_v24  ;;  %935 = vmatpush.msra.mxu1 %v371_v25  ;;  %v451_v23 = vld [vmem:[#allocation5 + $0xb78] sm:$0xff]  ;;  %v356_v24 = vld [vmem:[#allocation5 + $0x880] sm:$0xff] }
  0x9f   :  { %956 = vmatpush.msra.mxu2 %v386_v29  ;;  %975 = vmatpush.msra.mxu3 %v403_v30  ;;  %v388_v25 = vld [vmem:[#allocation5 + $0x980] sm:$0xff]  ;;  %v553_v29 = vld.sshfl [vmem:[#allocation1 + $0x8] sm:$0xff pattern:$0x73625140] }
  0xa0   :  { %917 = vmatpush.msra.mxu0 %v353_v33  ;;  %936 = vmatpush.msra.mxu1 %v370_v34  ;;  %v555_v30 = vld.sshfl [vmem:[#allocation1 + $0x18] sm:$0xff pattern:$0x73625140]  ;;  %v418_v33 = vld [vmem:[#allocation5 + $0xa70] sm:$0xff] }
  0xa1   :  { %957 = vmatpush.msra.mxu2 %v385_v28  ;;  %976 = vmatpush.msra.mxu3 %v402_v26  ;;  %v435_v34 = vld [vmem:[#allocation5 + $0xaf8] sm:$0xff]  ;;  %v450_v28 = vld [vmem:[#allocation5 + $0xb70] sm:$0xff] }
  0xa2   :  { %918 = vmatpush.msra.mxu0 %v352_v27  ;;  %937 = vmatpush.msra.mxu1 %v369_v31  ;;  %v467_v26 = vld [vmem:[#allocation5 + $0xbf8] sm:$0xff]  ;;  %v417_v27 = vld [vmem:[#allocation5 + $0xa68] sm:$0xff]  ;;  %v434_v31 = vld [vmem:[#allocation5 + $0xaf0] sm:$0xff] }
  0xa3   :  { %958 = vmatpush.msra.mxu2 %v384_v36  ;;  %977 = vmatpush.msra.mxu3 %v401_v37  ;;  %v449_v36 = vld [vmem:[#allocation5 + $0xb68] sm:$0xff]  ;;  %v466_v37 = vld [vmem:[#allocation5 + $0xbf0] sm:$0xff] }
  0xa4   :  { %919 = vmatpush.msra.mxu0 %v351_v38  ;;  %938 = vmatpush.msra.mxu1 %v368_v32  ;;  %v416_v38 = vld [vmem:[#allocation5 + $0xa60] sm:$0xff]  ;;  %v433_v32 = vld [vmem:[#allocation5 + $0xae8] sm:$0xff] }
  0xa5   :  { %959 = vmatpush.msra.mxu2 %v383_v35  ;;  %978 = vmatpush.msra.mxu3 %v400_v39  ;;  %v448_v35 = vld [vmem:[#allocation5 + $0xb60] sm:$0xff]  ;;  %v465_v39 = vld [vmem:[#allocation5 + $0xbe8] sm:$0xff] }
  0xa6   :  { %920 = vmatpush.msra.mxu0 %v350_v40  ;;  %939 = vmatpush.msra.mxu1 %v367_v41  ;;  %v415_v40 = vld [vmem:[#allocation5 + $0xa58] sm:$0xff]  ;;  %v432_v41 = vld [vmem:[#allocation5 + $0xae0] sm:$0xff] }
  0xa7   :  { %960 = vmatpush.msra.mxu2 %v382_v42  ;;  %979 = vmatpush.msra.mxu3 %v399_v43  ;;  %v447_v42 = vld [vmem:[#allocation5 + $0xb58] sm:$0xff]  ;;  %v464_v43 = vld [vmem:[#allocation5 + $0xbe0] sm:$0xff] }
  0xa8   :  { %921 = vmatpush.msra.mxu0 %v349_v44  ;;  %940 = vmatpush.msra.mxu1 %v366_v45  ;;  %v414_v44 = vld [vmem:[#allocation5 + $0xa50] sm:$0xff]  ;;  %v431_v45 = vld [vmem:[#allocation5 + $0xad8] sm:$0xff] }
  0xa9   :  { %961 = vmatpush.msra.mxu2 %v381_v46  ;;  %980 = vmatpush.msra.mxu3 %v398_v47  ;;  %v446_v46 = vld [vmem:[#allocation5 + $0xb50] sm:$0xff]  ;;  %v463_v47 = vld [vmem:[#allocation5 + $0xbd8] sm:$0xff] }
  0xaa   :  { %922 = vmatpush.msra.mxu0 %v348_v48  ;;  %941 = vmatpush.msra.mxu1 %v365_v49  ;;  %v413_v48 = vld [vmem:[#allocation5 + $0xa48] sm:$0xff]  ;;  %v430_v49 = vld [vmem:[#allocation5 + $0xad0] sm:$0xff] }
  0xab   :  { %962 = vmatpush.msra.mxu2 %v380_v50  ;;  %981 = vmatpush.msra.mxu3 %v397_v51  ;;  %v445_v50 = vld [vmem:[#allocation5 + $0xb48] sm:$0xff]  ;;  %v462_v51 = vld [vmem:[#allocation5 + $0xbd0] sm:$0xff] }
  0xac   :  { %923 = vmatpush.msra.mxu0 %v347_v52  ;;  %942 = vmatpush.msra.mxu1 %v364_v53  ;;  %v412_v52 = vld [vmem:[#allocation5 + $0xa40] sm:$0xff]  ;;  %v429_v53 = vld [vmem:[#allocation5 + $0xac8] sm:$0xff] }
  0xad   :  { %963 = vmatpush.msra.mxu2 %v379_v54  ;;  %982 = vmatpush.msra.mxu3 %v396_v55  ;;  %v444_v54 = vld [vmem:[#allocation5 + $0xb40] sm:$0xff]  ;;  %v461_v55 = vld [vmem:[#allocation5 + $0xbc8] sm:$0xff] }
  0xae   :  { %924 = vmatpush.msra.mxu0 %v346_v56  ;;  %943 = vmatpush.msra.mxu1 %v363_v57  ;;  %v411_v56 = vld [vmem:[#allocation5 + $0xa38] sm:$0xff]  ;;  %v428_v57 = vld [vmem:[#allocation5 + $0xac0] sm:$0xff] }
  0xaf   :  { %964 = vmatpush.msra.mxu2 %v378_v58  ;;  %983 = vmatpush.msra.mxu3 %v395_v59  ;;  %v443_v58 = vld [vmem:[#allocation5 + $0xb38] sm:$0xff]  ;;  %v460_v59 = vld [vmem:[#allocation5 + $0xbc0] sm:$0xff] }
  0xb0   :  { %925 = vmatpush.msra.mxu0 %v345_v60  ;;  %944 = vmatpush.msra.mxu1 %v362_v61  ;;  %v410_v60 = vld [vmem:[#allocation5 + $0xa30] sm:$0xff]  ;;  %v427_v61 = vld [vmem:[#allocation5 + $0xab8] sm:$0xff] }
  0xb1   :  { %965 = vmatpush.msra.mxu2 %v377_v62  ;;  %984 = vmatpush.msra.mxu3 %v394_v63  ;;  %v442_v62 = vld [vmem:[#allocation5 + $0xb30] sm:$0xff]  ;;  %v459_v63 = vld [vmem:[#allocation5 + $0xbb8] sm:$0xff] }
  0xb2   :  { %926 = vmatpush.msra.mxu0 %v344_v0  ;;  %945 = vmatpush.msra.mxu1 %v361_v1  ;;  %v409_v0 = vld [vmem:[#allocation5 + $0xa28] sm:$0xff]  ;;  %v426_v1 = vld [vmem:[#allocation5 + $0xab0] sm:$0xff] }
  0xb3   :  { %966 = vmatpush.msra.mxu2 %v376_v2  ;;  %985 = vmatpush.msra.mxu3 %v393_v3  ;;  %v441_v2 = vld [vmem:[#allocation5 + $0xb28] sm:$0xff]  ;;  %v458_v3 = vld [vmem:[#allocation5 + $0xbb0] sm:$0xff] }
  0xb4   :  { %927 = vmatpush.msra.mxu0 %v343_v4  ;;  %946 = vmatpush.msra.mxu1 %v360_v5  ;;  %v408_v4 = vld [vmem:[#allocation5 + $0xa20] sm:$0xff]  ;;  %v425_v5 = vld [vmem:[#allocation5 + $0xaa8] sm:$0xff] }
  0xb5   :  { %967 = vmatpush.msra.mxu2 %v375_v6  ;;  %986 = vmatpush.msra.mxu3 %v392_v7  ;;  %v440_v6 = vld [vmem:[#allocation5 + $0xb20] sm:$0xff]  ;;  %v457_v7 = vld [vmem:[#allocation5 + $0xba8] sm:$0xff] }
  0xb6   :  { %928 = vmatpush.msra.mxu0 %v342_v8  ;;  %947 = vmatpush.msra.mxu1 %v359_v9  ;;  %v407_v8 = vld [vmem:[#allocation5 + $0xa18] sm:$0xff]  ;;  %v424_v9 = vld [vmem:[#allocation5 + $0xaa0] sm:$0xff] }
  0xb7   :  { %968 = vmatpush.msra.mxu2 %v374_v10  ;;  %987 = vmatpush.msra.mxu3 %v391_v11  ;;  %v439_v10 = vld [vmem:[#allocation5 + $0xb18] sm:$0xff]  ;;  %v456_v11 = vld [vmem:[#allocation5 + $0xba0] sm:$0xff] }
  0xb8   :  { %929 = vmatpush.msra.mxu0 %v341_v12  ;;  %948 = vmatpush.msra.mxu1 %v358_v13  ;;  %v406_v12 = vld [vmem:[#allocation5 + $0xa10] sm:$0xff]  ;;  %v423_v13 = vld [vmem:[#allocation5 + $0xa98] sm:$0xff] }
  0xb9   :  { %969 = vmatpush.msra.mxu2 %v373_v14  ;;  %988 = vmatpush.msra.mxu3 %v390_v15  ;;  %v438_v14 = vld [vmem:[#allocation5 + $0xb10] sm:$0xff]  ;;  %v455_v15 = vld [vmem:[#allocation5 + $0xb98] sm:$0xff] }
  0xba   :  { %930 = vmatpush.msra.mxu0 %v340_v16  ;;  %949 = vmatpush.msra.mxu1 %v357_v17  ;;  %v405_v16 = vld [vmem:[#allocation5 + $0xa08] sm:$0xff]  ;;  %v422_v17 = vld [vmem:[#allocation5 + $0xa90] sm:$0xff] }
  0xbb   :  { %970 = vmatpush.msra.mxu2 %v372_v18  ;;  %989 = vmatpush.msra.mxu3 %v389_v19  ;;  %v83_v18 = vld [vmem:[#allocation2 + $0x30] sm:$0xff]  ;;  %v437_v19 = vld [vmem:[#allocation5 + $0xb08] sm:$0xff] }
  0xbc   :  { %931 = vmatmul.f32.vlgmr.msra.gmra.mxu0 %v552_v20  ;;  %971 = vmatmul.f32.vlgmr.msra.gmra.mxu2 %v554_v21  ;;  %v454_v20 = vld [vmem:[#allocation5 + $0xb90] sm:$0xff]  ;;  %560 = vst [vmem:[#allocation1] ss:$4 sm:$0xff] %v83_v18  ;;  %v404_v21 = vld [vmem:[#allocation5 + $0xa00] sm:$0xff] }
  0xbd   :  { %995 = vmatpush.msrb.mxu0 %v419_v22  ;;  %1035 = vmatpush.msrb.mxu2 %v451_v23  ;;  %v421_v22 = vld [vmem:[#allocation5 + $0xa88] sm:$0xff]  ;;  %v436_v23 = vld [vmem:[#allocation5 + $0xb00] sm:$0xff] }
  0xbe   :  { %950 = vmatpush.msra.mxu1 %v356_v24  ;;  %990 = vmatpush.msra.mxu3 %v388_v25  ;;  %v453_v24 = vld [vmem:[#allocation5 + $0xb88] sm:$0xff]  ;;  %v556_v25 = vld.sshfl [vmem:[#allocation1 + $0x20] sm:$0xff pattern:$0x73625140] }
  0xbf   :  { %951 = vmatmul.f32.vlgmr.msra.gmra.mxu1 %v553_v29  ;;  %991 = vmatmul.f32.vlgmr.msra.gmra.mxu3 %v555_v30  ;;  %v558_v29 = vld.sshfl [vmem:[#allocation1 + $0x30] sm:$0xff pattern:$0x73625140]  ;;  %v483_v30 = vld [vmem:[#allocation5 + $0xc78] sm:$0xff] }
  0xc0   :  { %996 = vmatpush.msrb.mxu0 %v418_v33  ;;  %1015 = vmatpush.msrb.mxu1 %v435_v34  ;;  %v515_v33 = vld [vmem:[#allocation5 + $0xd78] sm:$0xff]  ;;  %v420_v34 = vld [vmem:[#allocation5 + $0xa80] sm:$0xff] }
  0xc1   :  { %1036 = vmatpush.msrb.mxu2 %v450_v28  ;;  %1055 = vmatpush.msrb.mxu3 %v467_v26  ;;  %v452_v28 = vld [vmem:[#allocation5 + $0xb80] sm:$0xff]  ;;  %v557_v26 = vld.sshfl [vmem:[#allocation1 + $0x28] sm:$0xff pattern:$0x73625140] }
  0xc2   :  { %997 = vmatpush.msrb.mxu0 %v417_v27  ;;  %1016 = vmatpush.msrb.mxu1 %v434_v31  ;;  %v559_v27 = vld.sshfl [vmem:[#allocation1 + $0x38] sm:$0xff pattern:$0x73625140]  ;;  %v482_v31 = vld [vmem:[#allocation5 + $0xc70] sm:$0xff] }
  0xc3   :  { %1037 = vmatpush.msrb.mxu2 %v449_v36  ;;  %1056 = vmatpush.msrb.mxu3 %v466_v37  ;;  %v499_v36 = vld [vmem:[#allocation5 + $0xcf8] sm:$0xff]  ;;  %v514_v37 = vld [vmem:[#allocation5 + $0xd70] sm:$0xff] }
  0xc4   :  { %998 = vmatpush.msrb.mxu0 %v416_v38  ;;  %1017 = vmatpush.msrb.mxu1 %v433_v32  ;;  %v517_v38 = vld [vmem:[#allocation5 + $0xd88] sm:$0xff]  ;;  %v563_v18 = vld.sshfl [vmem:[#allocation1 + $0x10] sm:$0xff pattern:$0x73625140] }
  0xc5   :  { %1038 = vmatpush.msrb.mxu2 %v448_v35  ;;  %1057 = vmatpush.msrb.mxu3 %v465_v39  ;;  %v481_v32 = vld [vmem:[#allocation5 + $0xc68] sm:$0xff]  ;;  %v498_v35 = vld [vmem:[#allocation5 + $0xcf0] sm:$0xff] }
  0xc6   :  { %999 = vmatpush.msrb.mxu0 %v415_v40  ;;  %1018 = vmatpush.msrb.mxu1 %v432_v41  ;;  %v513_v39 = vld [vmem:[#allocation5 + $0xd68] sm:$0xff]  ;;  %v516_v40 = vld [vmem:[#allocation5 + $0xd80] sm:$0xff] }
  0xc7   :  { %1039 = vmatpush.msrb.mxu2 %v447_v42  ;;  %1058 = vmatpush.msrb.mxu3 %v464_v43  ;;  %v480_v41 = vld [vmem:[#allocation5 + $0xc60] sm:$0xff]  ;;  %v497_v42 = vld [vmem:[#allocation5 + $0xce8] sm:$0xff] }
  0xc8   :  { %1000 = vmatpush.msrb.mxu0 %v414_v44  ;;  %1019 = vmatpush.msrb.mxu1 %v431_v45  ;;  %v512_v43 = vld [vmem:[#allocation5 + $0xd60] sm:$0xff]  ;;  %v479_v44 = vld [vmem:[#allocation5 + $0xc58] sm:$0xff] }
  0xc9   :  { %1040 = vmatpush.msrb.mxu2 %v446_v46  ;;  %1059 = vmatpush.msrb.mxu3 %v463_v47  ;;  %v496_v45 = vld [vmem:[#allocation5 + $0xce0] sm:$0xff]  ;;  %v511_v46 = vld [vmem:[#allocation5 + $0xd58] sm:$0xff] }
  0xca   :  { %1001 = vmatpush.msrb.mxu0 %v413_v48  ;;  %1020 = vmatpush.msrb.mxu1 %v430_v49  ;;  %v564_v47 = vld.sshfl [vmem:[#allocation1 + $0x18] sm:$0xff pattern:$0x73625140]  ;;  %v478_v48 = vld [vmem:[#allocation5 + $0xc50] sm:$0xff] }
  0xcb   :  { %1041 = vmatpush.msrb.mxu2 %v445_v50  ;;  %1060 = vmatpush.msrb.mxu3 %v462_v51  ;;  %v495_v49 = vld [vmem:[#allocation5 + $0xcd8] sm:$0xff]  ;;  %v510_v50 = vld [vmem:[#allocation5 + $0xd50] sm:$0xff]  ;;  %v477_v51 = vld [vmem:[#allocation5 + $0xc48] sm:$0xff] }
  0xcc   :  { %1002 = vmatpush.msrb.mxu0 %v412_v52  ;;  %1021 = vmatpush.msrb.mxu1 %v429_v53  ;;  %v494_v52 = vld [vmem:[#allocation5 + $0xcd0] sm:$0xff]  ;;  %v509_v53 = vld [vmem:[#allocation5 + $0xd48] sm:$0xff] }
  0xcd   :  { %1042 = vmatpush.msrb.mxu2 %v444_v54  ;;  %1061 = vmatpush.msrb.mxu3 %v461_v55  ;;  %v476_v54 = vld [vmem:[#allocation5 + $0xc40] sm:$0xff]  ;;  %v493_v55 = vld [vmem:[#allocation5 + $0xcc8] sm:$0xff] }
  0xce   :  { %1003 = vmatpush.msrb.mxu0 %v411_v56  ;;  %1022 = vmatpush.msrb.mxu1 %v428_v57  ;;  %v508_v56 = vld [vmem:[#allocation5 + $0xd40] sm:$0xff]  ;;  %v475_v57 = vld [vmem:[#allocation5 + $0xc38] sm:$0xff] }
  0xcf   :  { %1043 = vmatpush.msrb.mxu2 %v443_v58  ;;  %1062 = vmatpush.msrb.mxu3 %v460_v59  ;;  %v492_v58 = vld [vmem:[#allocation5 + $0xcc0] sm:$0xff]  ;;  %v507_v59 = vld [vmem:[#allocation5 + $0xd38] sm:$0xff] }
  0xd0   :  { %1004 = vmatpush.msrb.mxu0 %v410_v60  ;;  %1023 = vmatpush.msrb.mxu1 %v427_v61  ;;  %v474_v60 = vld [vmem:[#allocation5 + $0xc30] sm:$0xff]  ;;  %v491_v61 = vld [vmem:[#allocation5 + $0xcb8] sm:$0xff] }
  0xd1   :  { %1044 = vmatpush.msrb.mxu2 %v442_v62  ;;  %1063 = vmatpush.msrb.mxu3 %v459_v63  ;;  %v506_v62 = vld [vmem:[#allocation5 + $0xd30] sm:$0xff]  ;;  %v473_v63 = vld [vmem:[#allocation5 + $0xc28] sm:$0xff] }
  0xd2   :  { %1005 = vmatpush.msrb.mxu0 %v409_v0  ;;  %1024 = vmatpush.msrb.mxu1 %v426_v1  ;;  %v490_v0 = vld [vmem:[#allocation5 + $0xcb0] sm:$0xff]  ;;  %v505_v1 = vld [vmem:[#allocation5 + $0xd28] sm:$0xff] }
  0xd3   :  { %1045 = vmatpush.msrb.mxu2 %v441_v2  ;;  %1064 = vmatpush.msrb.mxu3 %v458_v3  ;;  %v472_v2 = vld [vmem:[#allocation5 + $0xc20] sm:$0xff]  ;;  %v489_v3 = vld [vmem:[#allocation5 + $0xca8] sm:$0xff] }
  0xd4   :  { %1006 = vmatpush.msrb.mxu0 %v408_v4  ;;  %1025 = vmatpush.msrb.mxu1 %v425_v5  ;;  %v504_v4 = vld [vmem:[#allocation5 + $0xd20] sm:$0xff]  ;;  %v471_v5 = vld [vmem:[#allocation5 + $0xc18] sm:$0xff] }
  0xd5   :  { %1046 = vmatpush.msrb.mxu2 %v440_v6  ;;  %1065 = vmatpush.msrb.mxu3 %v457_v7  ;;  %v488_v6 = vld [vmem:[#allocation5 + $0xca0] sm:$0xff]  ;;  %v503_v7 = vld [vmem:[#allocation5 + $0xd18] sm:$0xff] }
  0xd6   :  { %1007 = vmatpush.msrb.mxu0 %v407_v8  ;;  %1026 = vmatpush.msrb.mxu1 %v424_v9  ;;  %v470_v8 = vld [vmem:[#allocation5 + $0xc10] sm:$0xff]  ;;  %v487_v9 = vld [vmem:[#allocation5 + $0xc98] sm:$0xff] }
  0xd7   :  { %1047 = vmatpush.msrb.mxu2 %v439_v10  ;;  %1066 = vmatpush.msrb.mxu3 %v456_v11  ;;  %v502_v10 = vld [vmem:[#allocation5 + $0xd10] sm:$0xff]  ;;  %v469_v11 = vld [vmem:[#allocation5 + $0xc08] sm:$0xff] }
  0xd8   :  { %1008 = vmatpush.msrb.mxu0 %v406_v12  ;;  %1027 = vmatpush.msrb.mxu1 %v423_v13  ;;  %v486_v12 = vld [vmem:[#allocation5 + $0xc90] sm:$0xff]  ;;  %v501_v13 = vld [vmem:[#allocation5 + $0xd08] sm:$0xff] }
  0xd9   :  { %1048 = vmatpush.msrb.mxu2 %v438_v14  ;;  %1067 = vmatpush.msrb.mxu3 %v455_v15  ;;  %v468_v14 = vld [vmem:[#allocation5 + $0xc00] sm:$0xff]  ;;  %v485_v15 = vld [vmem:[#allocation5 + $0xc88] sm:$0xff] }
  0xda   :  { %1009 = vmatpush.msrb.mxu0 %v405_v16  ;;  %1028 = vmatpush.msrb.mxu1 %v422_v17  ;;  %v500_v16 = vld [vmem:[#allocation5 + $0xd00] sm:$0xff] }
  0xdb   :  { %1049 = vmatpush.msrb.mxu2 %v437_v19  ;;  %1068 = vmatpush.msrb.mxu3 %v454_v20  ;;  %v561_v17 = vld.sshfl [vmem:[#allocation1] sm:$0xff pattern:$0x73625140]  ;;  %v562_v20 = vld.sshfl [vmem:[#allocation1 + $0x8] sm:$0xff pattern:$0x73625140] }
  0xdc   :  { %1010 = vmatpush.msrb.mxu0 %v404_v21  ;;  %1029 = vmatpush.msrb.mxu1 %v421_v22  ;;  %v484_v19 = vld [vmem:[#allocation5 + $0xc80] sm:$0xff]  ;;  %v1351_v21 = vld [vmem:[#allocation7] ss:$0 sm:$0xff]  ;;  %v612_v22 = vpop.f32.mrf.mxu0 }
  0xdd   :  { %1050 = vmatpush.msrb.mxu2 %v436_v23  ;;  %1069 = vmatpush.msrb.mxu3 %v453_v24  ;;  %v613_v23 = vadd.f32 %v1351_v21, %v612_v22  ;;  %v632_v24 = vpop.f32.mrf.mxu1  ;;  %v1202_v22 = vld [vmem:[#allocation8 + $0xc8] sm:$0xff] }
  0xde   :  { %1011 = vmatmul.f32.vlgmr.msrb.gmra.mxu0 %v556_v25  ;;  %1051 = vmatmul.f32.vlgmr.msrb.gmra.mxu2 %v558_v29  ;;  %v652_v29 = vpop.f32.mrf.mxu2 }
  0xdf   :  { %1075 = vmatpush.msra.mxu0 %v483_v30  ;;  %1115 = vmatpush.msra.mxu2 %v515_v33  ;;  %v633_v25 = vadd.f32 %v632_v24, %v613_v23  ;;  %v672_v33 = vpop.f32.mrf.mxu3  ;;  %v1201_v24 = vld [vmem:[#allocation8 + $0xc0] sm:$0xff] }
  0xe0   :  { %1030 = vmatpush.msrb.mxu1 %v420_v34  ;;  %1070 = vmatpush.msrb.mxu3 %v452_v28 }
  0xe1   :  { %1031 = vmatmul.f32.vlgmr.msrb.gmra.mxu1 %v557_v26  ;;  %1071 = vmatmul.f32.vlgmr.msrb.gmra.mxu3 %v559_v27  ;;  %v653_v30 = vadd.f32 %v652_v29, %v633_v25 }
  0xe2   :  { %1076 = vmatpush.msra.mxu0 %v482_v31  ;;  %1095 = vmatpush.msra.mxu1 %v499_v36 }
  0xe3   :  { %1116 = vmatpush.msra.mxu2 %v514_v37  ;;  %1149 = vmatpush.msra.mxu3 %v517_v38  ;;  %v673_v34 = vadd.f32 %v672_v33, %v653_v30  ;;  %v1170_v37 = vld [vmem:[#allocation8 + $0x78] sm:$0xff]  ;;  %v1169_v38 = vld [vmem:[#allocation8 + $0x70] sm:$0xff] }
  0xe4   :  { %1077 = vmatpush.msra.mxu0 %v481_v32  ;;  %1096 = vmatpush.msra.mxu1 %v498_v35  ;;  %v692_v28 = vpop.f32.mrf.mxu0  ;;  %v1168_v32 = vld [vmem:[#allocation8 + $0x68] sm:$0xff]  ;;  %v1200_v30 = vld [vmem:[#allocation8 + $0xb8] sm:$0xff] }
  0xe5   :  { %1117 = vmatpush.msra.mxu2 %v513_v39  ;;  %1150 = vmatpush.msra.mxu3 %v516_v40  ;;  %v693_v26 = vadd.f32 %v692_v28, %v673_v34  ;;  %v712_v27 = vpop.f32.mrf.mxu1  ;;  %v1167_v40 = vld [vmem:[#allocation8 + $0x60] sm:$0xff]  ;;  %v1199_v34 = vld [vmem:[#allocation8 + $0xb0] sm:$0xff] }
  0xe6   :  { %1078 = vmatpush.msra.mxu0 %v480_v41  ;;  %1097 = vmatpush.msra.mxu1 %v497_v42  ;;  %v732_v36 = vpop.f32.mrf.mxu2  ;;  %v1166_v42 = vld [vmem:[#allocation8 + $0x58] sm:$0xff] }
  0xe7   :  { %1118 = vmatpush.msra.mxu2 %v512_v43  ;;  %v713_v31 = vadd.f32 %v712_v27, %v693_v26  ;;  %1171 = vmatpush.msrb.mxu3 %v1170_v37  ;;  %v752_v39 = vpop.f32.mrf.mxu3  ;;  %v1198_v26 = vld [vmem:[#allocation8 + $0xa8] sm:$0xff] }
  0xe8   :  { %1079 = vmatpush.msra.mxu0 %v479_v44  ;;  %1098 = vmatpush.msra.mxu1 %v496_v45  ;;  %v1165_v44 = vld [vmem:[#allocation8 + $0x50] sm:$0xff] }
  0xe9   :  { %1119 = vmatpush.msra.mxu2 %v511_v46  ;;  %1343 = vmatmul.msk.f32.vlgmr.msra.gmra.mxu3 %vm592_vm0, %v564_v47  ;;  %v733_v35 = vadd.f32 %v732_v36, %v713_v31  ;;  %v1164_v47 = vld [vmem:[#allocation8 + $0x48] sm:$0xff]  ;;  %v1197_v36 = vld [vmem:[#allocation8 + $0xa0] sm:$0xff] }
  0xea   :  { %1080 = vmatpush.msra.mxu0 %v478_v48  ;;  %1099 = vmatpush.msra.mxu1 %v495_v49  ;;  %v1163_v49 = vld [vmem:[#allocation8 + $0x40] sm:$0xff] }
  0xeb   :  { %1120 = vmatpush.msra.mxu2 %v510_v50  ;;  %1172 = vmatpush.msrb.mxu3 %v1169_v38  ;;  %v753_v43 = vadd.f32 %v752_v39, %v733_v35  ;;  %v1196_v38 = vld [vmem:[#allocation8 + $0x98] sm:$0xff]  ;;  %v1195_v35 = vld [vmem:[#allocation8 + $0x90] sm:$0xff] }
  0xec   :  { %1081 = vmatpush.msra.mxu0 %v477_v51  ;;  %1100 = vmatpush.msra.mxu1 %v494_v52  ;;  %v1162_v51 = vld [vmem:[#allocation8 + $0x38] sm:$0xff] }
  0xed   :  { %1121 = vmatpush.msra.mxu2 %v509_v53  ;;  %1173 = vmatpush.msrb.mxu3 %v1168_v32 }
  0xee   :  { %1082 = vmatpush.msra.mxu0 %v476_v54  ;;  %1101 = vmatpush.msra.mxu1 %v493_v55  ;;  %v1161_v54 = vld [vmem:[#allocation8 + $0x30] sm:$0xff] }
  0xef   :  { %1122 = vmatpush.msra.mxu2 %v508_v56  ;;  %1174 = vmatpush.msrb.mxu3 %v1167_v40 }
  0xf0   :  { %1083 = vmatpush.msra.mxu0 %v475_v57  ;;  %1102 = vmatpush.msra.mxu1 %v492_v58 }
  0xf1   :  { %1123 = vmatpush.msra.mxu2 %v507_v59  ;;  %1175 = vmatpush.msrb.mxu3 %v1166_v42  ;;  %v1160_v59 = vld [vmem:[#allocation8 + $0x28] sm:$0xff] }
  0xf2   :  { %1084 = vmatpush.msra.mxu0 %v474_v60  ;;  %1103 = vmatpush.msra.mxu1 %v491_v61 }
  0xf3   :  { %1124 = vmatpush.msra.mxu2 %v506_v62  ;;  %1176 = vmatpush.msrb.mxu3 %v1165_v44  ;;  %v1159_v62 = vld [vmem:[#allocation8 + $0x20] sm:$0xff]  ;;  %v1194_v44 = vld [vmem:[#allocation8 + $0x88] sm:$0xff] }
  0xf4   :  { %1085 = vmatpush.msra.mxu0 %v473_v63  ;;  %1104 = vmatpush.msra.mxu1 %v490_v0  ;;  %v1158_v63 = vld [vmem:[#allocation8 + $0x18] sm:$0xff] }
  0xf5   :  { %1125 = vmatpush.msra.mxu2 %v505_v1  ;;  %v772_v41 = vpop.f32.mrf.mxu0  ;;  %1177 = vmatpush.msrb.mxu3 %v1164_v47  ;;  %v1245_v47 = vld [vmem:[#allocation8 + $0x170] sm:$0xff] }
  0xf6   :  { %1086 = vmatpush.msra.mxu0 %v472_v2  ;;  %1105 = vmatpush.msra.mxu1 %v489_v3  ;;  %v773_v45 = vadd.f32 %v772_v41, %v753_v43  ;;  %v1157_v2 = vld [vmem:[#allocation8 + $0x10] sm:$0xff] }
  0xf7   :  { %1126 = vmatpush.msra.mxu2 %v504_v4  ;;  %1178 = vmatpush.msrb.mxu3 %v1163_v49  ;;  %v1243_v49 = vld [vmem:[#allocation8 + $0x160] sm:$0xff] }
  0xf8   :  { %1087 = vmatpush.msra.mxu0 %v471_v5  ;;  %1106 = vmatpush.msra.mxu1 %v488_v6  ;;  %v792_v46 = vpop.f32.mrf.mxu1  ;;  %v1156_v5 = vld [vmem:[#allocation8 + $0x8] sm:$0xff] }
  0xf9   :  { %1127 = vmatpush.msra.mxu2 %v503_v7  ;;  %v793_v50 = vadd.f32 %v792_v46, %v773_v45  ;;  %1179 = vmatpush.msrb.mxu3 %v1162_v51  ;;  %v1155_v7 = vld [vmem:[#allocation8] sm:$0xff]  ;;  %v1246_v46 = vld [vmem:[#allocation8 + $0x178] sm:$0xff]  ;;  %v1241_v51 = vld [vmem:[#allocation8 + $0x150] sm:$0xff] }
  0xfa   :  { %1088 = vmatpush.msra.mxu0 %v470_v8  ;;  %1107 = vmatpush.msra.mxu1 %v487_v9  ;;  %v1208_v9 = vld [vmem:[#allocation8 + $0xf8] sm:$0xff]  ;;  %v1193_v45 = vld [vmem:[#allocation8 + $0x80] sm:$0xff] }
  0xfb   :  { %1128 = vmatpush.msra.mxu2 %v502_v10  ;;  %v812_v48 = vpop.f32.mrf.mxu2  ;;  %1180 = vmatpush.msrb.mxu3 %v1161_v54  ;;  %v1207_v10 = vld [vmem:[#allocation8 + $0xf0] sm:$0xff]  ;;  %v1238_v54 = vld [vmem:[#allocation8 + $0x138] sm:$0xff] }
  0xfc   :  { %1089 = vmatpush.msra.mxu0 %v469_v11  ;;  %1108 = vmatpush.msra.mxu1 %v486_v12  ;;  %v813_v52 = vadd.f32 %v812_v48, %v793_v50  ;;  %v1244_v48 = vld [vmem:[#allocation8 + $0x168] sm:$0xff]  ;;  %v1242_v50 = vld [vmem:[#allocation8 + $0x158] sm:$0xff] }
  0xfd   :  { %1129 = vmatpush.msra.mxu2 %v501_v13  ;;  %1181 = vmatpush.msrb.mxu3 %v1160_v59  ;;  %v1206_v13 = vld [vmem:[#allocation8 + $0xe8] sm:$0xff]  ;;  %v1233_v59 = vld [vmem:[#allocation8 + $0x110] sm:$0xff] }
  0xfe   :  { %1090 = vmatpush.msra.mxu0 %v468_v14  ;;  %1109 = vmatpush.msra.mxu1 %v485_v15  ;;  %v832_v53 = vpop.f32.mrf.mxu3  ;;  %v1205_v15 = vld [vmem:[#allocation8 + $0xe0] sm:$0xff] }
  0xff   :  { %1130 = vmatpush.msra.mxu2 %v500_v16  ;;  %1091 = vmatmul.f32.vlgmr.msra.gmra.mxu0 %v561_v17  ;;  %v833_v56 = vadd.f32 %v832_v53, %v813_v52  ;;  %v1204_v17 = vld [vmem:[#allocation8 + $0xd8] sm:$0xff]  ;;  %v1240_v52 = vld [vmem:[#allocation8 + $0x148] sm:$0xff]  ;;  %v1239_v53 = vld [vmem:[#allocation8 + $0x140] sm:$0xff] }
 0x100   :  { %1131 = vmatmul.f32.vlgmr.msra.gmra.mxu2 %v563_v18  ;;  %1110 = vmatpush.msra.mxu1 %v484_v19 }
 0x101   :  { %1111 = vmatmul.f32.vlgmr.msra.gmra.mxu1 %v562_v20  ;;  %1182 = vmatpush.msrb.mxu3 %v1159_v62  ;;  %v1203_v20 = vld [vmem:[#allocation8 + $0xd0] sm:$0xff]  ;;  %v1232_v62 = vld [vmem:[#allocation8 + $0x108] sm:$0xff] }
 0x102   :  { %1209 = vmatpush.msrb.mxu0 %v1208_v9  ;;  %1247 = vmatpush.msrb.mxu1 %v1246_v46 }
 0x103   :  { %1183 = vmatpush.msrb.mxu3 %v1158_v63  ;;  %v1231_v63 = vld [vmem:[#allocation8 + $0x100] sm:$0xff] }
 0x104   :  { %1210 = vmatpush.msrb.mxu0 %v1207_v10  ;;  %1248 = vmatpush.msrb.mxu1 %v1245_v47 }
 0x105   :  { %1184 = vmatpush.msrb.mxu3 %v1157_v2  ;;  %v1285_v2 = vld [vmem:[#allocation8 + $0x1e8] sm:$0xff] }
 0x106   :  { %1211 = vmatpush.msrb.mxu0 %v1206_v13  ;;  %1249 = vmatpush.msrb.mxu1 %v1244_v48  ;;  %v1276_v13 = vld [vmem:[#allocation8 + $0x1a0] sm:$0xff] }
 0x107   :  { %1185 = vmatpush.msrb.mxu3 %v1156_v5  ;;  %v1282_v5 = vld [vmem:[#allocation8 + $0x1d0] sm:$0xff] }
 0x108   :  { %1212 = vmatpush.msrb.mxu0 %v1205_v15  ;;  %1250 = vmatpush.msrb.mxu1 %v1243_v49  ;;  %v1274_v15 = vld [vmem:[#allocation8 + $0x190] sm:$0xff] }
 0x109   :  { %1186 = vmatpush.msrb.mxu3 %v1155_v7  ;;  %v1280_v7 = vld [vmem:[#allocation8 + $0x1c0] sm:$0xff] }
 0x10a   :  { %1213 = vmatpush.msrb.mxu0 %v1204_v17  ;;  %1251 = vmatpush.msrb.mxu1 %v1242_v50  ;;  %v1272_v17 = vld [vmem:[#allocation8 + $0x180] sm:$0xff] }
 0x10c   :  { %1214 = vmatpush.msrb.mxu0 %v1203_v20  ;;  %1252 = vmatpush.msrb.mxu1 %v1241_v51 }
 0x10e   :  { %1215 = vmatpush.msrb.mxu0 %v1202_v22  ;;  %1253 = vmatpush.msrb.mxu1 %v1240_v52 }
 0x110   :  { %1216 = vmatpush.msrb.mxu0 %v1201_v24  ;;  %1254 = vmatpush.msrb.mxu1 %v1239_v53 }
 0x112   :  { %1217 = vmatpush.msrb.mxu0 %v1200_v30  ;;  %1255 = vmatpush.msrb.mxu1 %v1238_v54 }
 0x114   :  { %1218 = vmatpush.msrb.mxu0 %v1199_v34 }
 0x116   :  { %1219 = vmatpush.msrb.mxu0 %v1198_v26 }
 0x117   :  { %v852_v55 = vpop.f32.mrf.mxu0 }
 0x118   :  { %v853_v57 = vadd.f32 %v852_v55, %v833_v56  ;;  %1220 = vmatpush.msrb.mxu0 %v1197_v36  ;;  %v1237_v55 = vld [vmem:[#allocation8 + $0x130] sm:$0xff]  ;;  %v1236_v56 = vld [vmem:[#allocation8 + $0x128] sm:$0xff] }
 0x119   :  { %1256 = vmatpush.msrb.mxu1 %v1237_v55 }
 0x11a   :  { %v872_v58 = vpop.f32.mrf.mxu1  ;;  %1221 = vmatpush.msrb.mxu0 %v1196_v38 }
 0x11b   :  { %v873_v61 = vadd.f32 %v872_v58, %v853_v57  ;;  %v1235_v57 = vld [vmem:[#allocation8 + $0x120] sm:$0xff]  ;;  %1257 = vmatpush.msrb.mxu1 %v1236_v56  ;;  %v1234_v58 = vld [vmem:[#allocation8 + $0x118] sm:$0xff] }
 0x11c   :  { %1222 = vmatpush.msrb.mxu0 %v1195_v35 }
 0x11d   :  { %v892_v60 = vpop.f32.mrf.mxu2  ;;  %1258 = vmatpush.msrb.mxu1 %v1235_v57 }
 0x11e   :  { %v893_v0 = vadd.f32 %v892_v60, %v873_v61  ;;  %1223 = vmatpush.msrb.mxu0 %v1194_v44 }
 0x11f   :  { %1259 = vmatpush.msrb.mxu1 %v1234_v58 }
 0x120   :  { %v912_v1 = vpop.f32.mrf.mxu3  ;;  %1224 = vmatpush.msrb.mxu0 %v1193_v45 }
 0x121   :  { %v913_v4 = vadd.f32 %v912_v1, %v893_v0  ;;  %1260 = vmatpush.msrb.mxu1 %v1233_v59  ;;  %v1287_v0 = vld [vmem:[#allocation8 + $0x1f8] sm:$0xff]  ;;  %v1286_v1 = vld [vmem:[#allocation8 + $0x1f0] sm:$0xff] }
 0x122   :  { %1288 = vmatpush.msrb.mxu2 %v1287_v0 }
 0x123   :  { %1261 = vmatpush.msrb.mxu1 %v1232_v62 }
 0x124   :  { %1289 = vmatpush.msrb.mxu2 %v1286_v1 }
 0x125   :  { %1262 = vmatpush.msrb.mxu1 %v1231_v63 }
 0x126   :  { %1290 = vmatpush.msrb.mxu2 %v1285_v2 }
 0x139   :  { %v932_v3 = vpop.f32.mrf.mxu0 }
 0x13a   :  { %v933_v6 = vadd.f32 %v932_v3, %v913_v4  ;;  %v1284_v3 = vld [vmem:[#allocation8 + $0x1e0] sm:$0xff]  ;;  %v1283_v4 = vld [vmem:[#allocation8 + $0x1d8] sm:$0xff] }
 0x13b   :  { %1291 = vmatpush.msrb.mxu2 %v1284_v3 }
 0x13c   :  { %v952_v8 = vpop.f32.mrf.mxu1 }
 0x13d   :  { %v953_v12 = vadd.f32 %v952_v8, %v933_v6  ;;  %1292 = vmatpush.msrb.mxu2 %v1283_v4  ;;  %v1281_v6 = vld [vmem:[#allocation8 + $0x1c8] sm:$0xff]  ;;  %v1279_v8 = vld [vmem:[#allocation8 + $0x1b8] sm:$0xff] }
 0x13f   :  { %v972_v11 = vpop.f32.mrf.mxu2  ;;  %1293 = vmatpush.msrb.mxu2 %v1282_v5 }
 0x140   :  { %v973_v14 = vadd.f32 %v972_v11, %v953_v12  ;;  %v1278_v11 = vld [vmem:[#allocation8 + $0x1b0] sm:$0xff]  ;;  %v1277_v12 = vld [vmem:[#allocation8 + $0x1a8] sm:$0xff] }
 0x141   :  { %1294 = vmatpush.msrb.mxu2 %v1281_v6 }
 0x142   :  { %v992_v16 = vpop.f32.mrf.mxu3 }
 0x143   :  { %v993_v19 = vadd.f32 %v992_v16, %v973_v14  ;;  %1295 = vmatpush.msrb.mxu2 %v1280_v7  ;;  %v1275_v14 = vld [vmem:[#allocation8 + $0x198] sm:$0xff]  ;;  %v1273_v16 = vld [vmem:[#allocation8 + $0x188] sm:$0xff] }
 0x145   :  { %1296 = vmatpush.msrb.mxu2 %v1279_v8 }
 0x147   :  { %1297 = vmatpush.msrb.mxu2 %v1278_v11 }
 0x149   :  { %1298 = vmatpush.msrb.mxu2 %v1277_v12 }
 0x14b   :  { %1299 = vmatpush.msrb.mxu2 %v1276_v13 }
 0x14d   :  { %1300 = vmatpush.msrb.mxu2 %v1275_v14 }
 0x14f   :  { %1301 = vmatpush.msrb.mxu2 %v1274_v15 }
 0x151   :  { %1302 = vmatpush.msrb.mxu2 %v1273_v16 }
 0x153   :  { %1303 = vmatpush.msrb.mxu2 %v1272_v17 }
 0x15b   :  { %v1012_v18 = vpop.f32.mrf.mxu0 }
 0x15c   :  { %v1013_v21 = vadd.f32 %v1012_v18, %v993_v19 }
 0x15e   :  { %v1032_v23 = vpop.f32.mrf.mxu1 }
 0x15f   :  { %v1033_v29 = vadd.f32 %v1032_v23, %v1013_v21 }
 0x161   :  { %v1052_v25 = vpop.f32.mrf.mxu2 }
 0x162   :  { %v1053_v33 = vadd.f32 %v1052_v25, %v1033_v29 }
 0x164   :  { %v1072_v28 = vpop.f32.mrf.mxu3 }
 0x165   :  { %v1073_v27 = vadd.f32 %v1072_v28, %v1053_v33 }
 0x16c   :  { %v1152_v41 = vpop.f32.mrf.mxu3 }
 0x17c   :  { %v1092_v31 = vpop.f32.mrf.mxu0 }
 0x17d   :  { %v1093_v37 = vadd.f32 %v1092_v31, %v1073_v27 }
 0x17e   :  { %v1112_v32 = vpop.f32.mrf.mxu1 }
 0x17f   :  { %v1113_v39 = vadd.f32 %v1112_v32, %v1093_v37 }
 0x183   :  { %v1132_v40 = vpop.f32.mrf.mxu2 }
 0x184   :  { %v1133_v42 = vadd.f32 %v1132_v40, %v1113_v39 }
 0x186   :  { %v1570_v43 = vadd.f32 %v1152_v41, %v1133_v42 }
 0x188   :  { %1187 = vmatmul.f32.vlgmr.msrb.gmra.mxu3 %v1570_v43 }
 0x20b   :  { %v1188_v60 = vpop.f32.mrf.mxu3 }
 0x20c   :  { %v1191_v61 = vmax.f32 %v1570_v43, %v1188_v60 }
 0x20e   :  { %1225 = vmatmul.f32.vlgmr.msrb.gmra.mxu0 %v1191_v61 }
 0x28b   :  { %v1226_v9 = vpop.f32.mrf.mxu0 }
 0x28c   :  { %v1229_v10 = vmax.f32 %v1191_v61, %v1226_v9 }
 0x28e   :  { %1263 = vmatmul.f32.vlgmr.msrb.gmra.mxu1 %v1229_v10 }
 0x30b   :  { %v1264_v18 = vpop.f32.mrf.mxu1 }
 0x30c   :  { %v1267_v19 = vmax.f32 %v1229_v10, %v1264_v18 }
 0x30e   :  { %v1268_v20 = vsub.f32 %v1570_v43, %v1267_v19 }
 0x310   :  { %v1269_v21 = vmul.f32 1.442695, %v1268_v20 }
 0x312   :  { %1352 = vpow2.f32 %v1269_v21 }
 0x318   :  { %v1353_v22 = vpop.eup %1352 }
 0x319   :  { %1304 = vmatmul.f32.vlgmr.msrb.gmra.mxu2 %v1353_v22 }
 0x39c   :  { %v1305_v23 = vpop.f32.mrf.mxu2 }
 0x39d   :  { %1354 = vrcp.f32 %v1305_v23  ;;  %v1319_v30 = vand.u32 2147483648, %v1305_v23  ;;  %v1317_v34 = vand.u32 2147483647, %v1305_v23  ;;  %vm1313_vm2 = vweird.f32 %v1305_v23 }
 0x39f   :  { %v1320_v26 = vor.u32 1.1754944e-38, %v1319_v30  ;;  %vm1318_vm4 = vcmp.eq.f32.partialorder %v1317_v34, 8.507059e+37 }
 0x3a3   :  { %v1355_v24 = vpop.eup %1354 }
 0x3a4   :  { %v1309_v25 = vmul.f32 %v1355_v24, %v1305_v23  ;;  %vm1314_vm1 = vweird.f32 %v1355_v24 }
 0x3a5   :  { %vm1315_vm3 = vmor %vm1313_vm2, %vm1314_vm1 }
 0x3a6   :  { %v1310_v29 = vsub.f32 1.0, %v1309_v25 }
 0x3a8   :  { %v1311_v33 = vmul.f32 %v1355_v24, %v1310_v29 }
 0x3aa   :  { %v1312_v28 = vadd.f32 %v1355_v24, %v1311_v33 }
 0x3ac   :  { %v1316_v27 = vsel %vm1315_vm3, %v1355_v24, %v1312_v28 }
 0x3ad   :  { %v1321_v31 = vsel %vm1318_vm4, %v1320_v26, %v1316_v27 }
 0x3ae   :  { %v1322_v36 = vmul.f32 %v1353_v22, %v1321_v31 }
 0x3b0   :  { %1323 = vst [vmem:[#allocation10] sm:$0x3] %v1322_v36 }
 0x3b1   :  { %1334 = dma.vmem_to_hbm [thread:$0]  %s1330_s3, 32, %s1332_s11, [#allocation4]  }
 0x3b2   :  { %1482 = dma.done.wait [#allocation4], 32  }
 0x3b3   :  { %1483 = vsyncadd [#allocation4], 4294967264 }
 0x3b4   :  { %1339 = vsyncpa [#allocation3], 1 }
 0x3b5   :  { %1340 = vsyncpa [#allocation6], 1 }
 0x3b6   :  { %1341 = vsyncpa [#allocation9], 1 }
 0x3b7   :  { %1342 = vsyncpa [#allocation4], 1 }

</bundles_post_ra>
